<compile_context>
chip_gen: v7x
topology: tpu7x:2x2x1
jax: 0.10.0
libtpu: 0.0.40
codegen_flags: <defaults>
</compile_context>

<pallas_src>
import jax
import jax.numpy as jnp
from jax.experimental import pallas as pl
from jax.experimental.pallas import tpu as pltpu

HIGHEST = jax.lax.Precision.HIGHEST


def vanilla_rnn_kernel(x_ref, wih_ref, whh_ref, bias_ref, wfc_ref, bfc_ref,
                       out_ref):
    # x_ref:    (T*B, I)  flattened time-major input
    # wih_ref:  (I, H)    input->hidden (already transposed)
    # whh_ref:  (H, H)    hidden->hidden (already transposed)
    # bias_ref: (1, H)    b_ih + b_hh
    # wfc_ref:  (T, H)    fc weight reshaped per-timestep
    # bfc_ref:  (1, 1)
    # out_ref:  (B, 1)
    T, H = wfc_ref.shape
    TB, _ = x_ref.shape
    B = TB // T

    whh = whh_ref[...]
    wfc = wfc_ref[...]

    # Hoisted input projection + bias: one matmul, off the serial h-chain.
    xproj = (jnp.dot(x_ref[...], wih_ref[...],
                     preferred_element_type=jnp.float32,
                     precision=HIGHEST)
             + bias_ref[...])                     # (T*B, H)

    h = jnp.zeros((B, H), dtype=jnp.float32)
    acc = jnp.zeros((B, H), dtype=jnp.float32)

    # Static (fully unrolled) loop over T.  Each step: one small MXU matmul
    # for the recurrence, one EUP tanh, one VPU multiply-accumulate for the
    # fused Linear.
    for t in range(T):
        pre = xproj[t * B:(t + 1) * B, :] + jnp.dot(
            h, whh, preferred_element_type=jnp.float32, precision=HIGHEST)
        h = jnp.tanh(pre)                         # (B, H)
        # Fused Linear(T*H, 1): accumulate h_t * W_fc[t*H:(t+1)*H] on the VPU.
        acc = acc + h * wfc[t:t + 1, :]           # (B, H)

    # Single cross-lane reduce (XLU), then bias + sigmoid.
    out = jnp.sum(acc, axis=-1, keepdims=True) + bfc_ref[...]   # (B, 1)
    out_ref[...] = jax.nn.sigmoid(out)


def vanilla_rnn_forward(x, params):
    """x: (B, T, I) float32 (batch_first, matches the PyTorch module)."""
    W_ih, W_hh, b_ih, b_hh, W_fc, b_fc = params
    B, T, I = x.shape
    H = W_hh.shape[0]

    # Glue: transpose / reshape parameters and input outside the kernel.
    x_tm = jnp.transpose(x, (1, 0, 2)).reshape(T * B, I).astype(jnp.float32)
    wih_t = jnp.transpose(W_ih).astype(jnp.float32)               # (I, H)
    whh_t = jnp.transpose(W_hh).astype(jnp.float32)               # (H, H)
    bias = (b_ih + b_hh).reshape(1, H).astype(jnp.float32)        # (1, H)
    wfc_r = W_fc.reshape(T, H).astype(jnp.float32)                # (T, H)
    bfc = b_fc.reshape(1, 1).astype(jnp.float32)                  # (1, 1)

    vmem = pl.BlockSpec(memory_space=pltpu.MemorySpace.VMEM)
    return pl.pallas_call(
        vanilla_rnn_kernel,
        out_shape=jax.ShapeDtypeStruct((B, 1), jnp.float32),
        in_specs=[vmem] * 6,
        out_specs=vmem,
    )(x_tm, wih_t, whh_t, bias, wfc_r, bfc)
    # TODO(synk): at realistic sizes (B >> 8, H >= 128) add a batch grid with
    # BlockSpec tiles + dimension_semantics=("parallel",) for v7x 2-TC split.


def init_params(key, input_size, hidden_size, sequence_length):
    """Deterministic init matching the PyTorch module's parameter shapes."""
    k = jax.random.split(key, 6)
    s_rnn = 1.0 / jnp.sqrt(hidden_size)
    s_fc = 1.0 / jnp.sqrt(hidden_size * sequence_length)
    W_ih = jax.random.uniform(k[0], (hidden_size, input_size), jnp.float32, -s_rnn, s_rnn)
    W_hh = jax.random.uniform(k[1], (hidden_size, hidden_size), jnp.float32, -s_rnn, s_rnn)
    b_ih = jax.random.uniform(k[2], (hidden_size,), jnp.float32, -s_rnn, s_rnn)
    b_hh = jax.random.uniform(k[3], (hidden_size,), jnp.float32, -s_rnn, s_rnn)
    W_fc = jax.random.uniform(k[4], (1, hidden_size * sequence_length), jnp.float32, -s_fc, s_fc)
    b_fc = jax.random.uniform(k[5], (1,), jnp.float32, -s_fc, s_fc)
    return W_ih, W_hh, b_ih, b_hh, W_fc, b_fc


def reference_forward(x, params):
    """Pure-JAX reference of the PyTorch forward (for correctness check)."""
    W_ih, W_hh, b_ih, b_hh, W_fc, b_fc = params
    B, T, I = x.shape
    H = W_hh.shape[0]
    h = jnp.zeros((B, H), jnp.float32)
    outs = []
    for t in range(T):
        h = jnp.tanh(jnp.dot(x[:, t, :], W_ih.T, precision=HIGHEST) + b_ih
                     + jnp.dot(h, W_hh.T, precision=HIGHEST) + b_hh)
        outs.append(h)
    out = jnp.stack(outs, axis=1).reshape(B, T * H)
    return jax.nn.sigmoid(jnp.dot(out, W_fc.T, precision=HIGHEST) + b_fc)


if __name__ == "__main__":
    # Shapes implied by the module: input_size=4 (Open/High/Low/Volume),
    # hidden_size=8, sequence_length=14, num_layers=1.  Small batch=2.
    batch, seq_len, input_size, hidden_size = 2, 14, 4, 8

    key = jax.random.PRNGKey(0)
    kx, kp = jax.random.split(key)
    x = jax.random.normal(kx, (batch, seq_len, input_size), dtype=jnp.float32)
    params = init_params(kp, input_size, hidden_size, seq_len)

    out = vanilla_rnn_forward(x, params)
    out = jax.block_until_ready(out)

    ref = reference_forward(x, params)
    assert out.shape == (batch, 1)
    assert jnp.allclose(out, ref, atol=1e-5, rtol=1e-5)

    print("KERNEL_OK")
</pallas_src>

<mosaic_0001>
module attributes {stable_mosaic.version = 11 : i64} {
  func.func @vanilla_rnn_kernel(%arg0: memref<28x4xf32, #tpu.memory_space<vmem>>, %arg1: memref<4x8xf32, #tpu.memory_space<vmem>>, %arg2: memref<8x8xf32, #tpu.memory_space<vmem>>, %arg3: memref<1x8xf32, #tpu.memory_space<vmem>>, %arg4: memref<14x8xf32, #tpu.memory_space<vmem>>, %arg5: memref<1x1xf32, #tpu.memory_space<vmem>>, %arg6: memref<2x1xf32, #tpu.memory_space<vmem>>) attributes {dimension_semantics = [], scalar_prefetch = 0 : i64, scratch_operands = 0 : i64, tpu.core_type = #tpu.core_type<tc>} {
    %c0 = arith.constant 0 : index
    %c0_0 = arith.constant 0 : index
    %0 = vector.load %arg2[%c0, %c0_0] : memref<8x8xf32, #tpu.memory_space<vmem>>, vector<8x8xf32>
    %c0_1 = arith.constant 0 : index
    %c0_2 = arith.constant 0 : index
    %1 = vector.load %arg4[%c0_1, %c0_2] : memref<14x8xf32, #tpu.memory_space<vmem>>, vector<14x8xf32>
    %c0_3 = arith.constant 0 : index
    %c0_4 = arith.constant 0 : index
    %2 = vector.load %arg0[%c0_3, %c0_4] : memref<28x4xf32, #tpu.memory_space<vmem>>, vector<28x4xf32>
    %c0_5 = arith.constant 0 : index
    %c0_6 = arith.constant 0 : index
    %3 = vector.load %arg1[%c0_5, %c0_6] : memref<4x8xf32, #tpu.memory_space<vmem>>, vector<4x8xf32>
    %cst = arith.constant dense<0.000000e+00> : vector<28x8xf32>
    %4 = tpu.matmul %2, %3, %cst {dimension_numbers = #tpu.dot_dimension_numbers<[1], [0], [0], [1], [0, 0, 1, 1], [], []>, precision = #tpu.contract_precision<fp32>} : vector<28x4xf32>, vector<4x8xf32>, vector<28x8xf32> -> vector<28x8xf32>
    %c0_7 = arith.constant 0 : index
    %c0_8 = arith.constant 0 : index
    %5 = vector.load %arg3[%c0_7, %c0_8] : memref<1x8xf32, #tpu.memory_space<vmem>>, vector<1x8xf32>
    %6 = vector.broadcast %5 : vector<1x8xf32> to vector<28x8xf32>
    %7 = arith.addf %4, %6 : vector<28x8xf32>
    %cst_9 = arith.constant 0.000000e+00 : f32
    %8 = vector.broadcast %cst_9 : f32 to vector<2x8xf32>
    %cst_10 = arith.constant 0.000000e+00 : f32
    %9 = vector.broadcast %cst_10 : f32 to vector<2x8xf32>
    %10 = vector.extract_strided_slice %7 {offsets = [0, 0], sizes = [2, 8], strides = [1, 1]} : vector<28x8xf32> to vector<2x8xf32>
    %cst_11 = arith.constant dense<0.000000e+00> : vector<2x8xf32>
    %11 = tpu.matmul %8, %0, %cst_11 {dimension_numbers = #tpu.dot_dimension_numbers<[1], [0], [0], [1], [0, 0, 1, 1], [], []>, precision = #tpu.contract_precision<fp32>} : vector<2x8xf32>, vector<8x8xf32>, vector<2x8xf32> -> vector<2x8xf32>
    %12 = arith.addf %10, %11 : vector<2x8xf32>
    %13 = math.tanh %12 : vector<2x8xf32>
    %14 = vector.extract_strided_slice %1 {offsets = [0, 0], sizes = [1, 8], strides = [1, 1]} : vector<14x8xf32> to vector<1x8xf32>
    %15 = vector.broadcast %14 : vector<1x8xf32> to vector<2x8xf32>
    %16 = arith.mulf %13, %15 : vector<2x8xf32>
    %17 = arith.addf %9, %16 : vector<2x8xf32>
    %18 = vector.extract_strided_slice %7 {offsets = [2, 0], sizes = [2, 8], strides = [1, 1]} : vector<28x8xf32> to vector<2x8xf32>
    %cst_12 = arith.constant dense<0.000000e+00> : vector<2x8xf32>
    %19 = tpu.matmul %13, %0, %cst_12 {dimension_numbers = #tpu.dot_dimension_numbers<[1], [0], [0], [1], [0, 0, 1, 1], [], []>, precision = #tpu.contract_precision<fp32>} : vector<2x8xf32>, vector<8x8xf32>, vector<2x8xf32> -> vector<2x8xf32>
    %20 = arith.addf %18, %19 : vector<2x8xf32>
    %21 = math.tanh %20 : vector<2x8xf32>
    %22 = vector.extract_strided_slice %1 {offsets = [1, 0], sizes = [1, 8], strides = [1, 1]} : vector<14x8xf32> to vector<1x8xf32>
    %23 = vector.broadcast %22 : vector<1x8xf32> to vector<2x8xf32>
    %24 = arith.mulf %21, %23 : vector<2x8xf32>
    %25 = arith.addf %17, %24 : vector<2x8xf32>
    %26 = vector.extract_strided_slice %7 {offsets = [4, 0], sizes = [2, 8], strides = [1, 1]} : vector<28x8xf32> to vector<2x8xf32>
    %cst_13 = arith.constant dense<0.000000e+00> : vector<2x8xf32>
    %27 = tpu.matmul %21, %0, %cst_13 {dimension_numbers = #tpu.dot_dimension_numbers<[1], [0], [0], [1], [0, 0, 1, 1], [], []>, precision = #tpu.contract_precision<fp32>} : vector<2x8xf32>, vector<8x8xf32>, vector<2x8xf32> -> vector<2x8xf32>
    %28 = arith.addf %26, %27 : vector<2x8xf32>
    %29 = math.tanh %28 : vector<2x8xf32>
    %30 = vector.extract_strided_slice %1 {offsets = [2, 0], sizes = [1, 8], strides = [1, 1]} : vector<14x8xf32> to vector<1x8xf32>
    %31 = vector.broadcast %30 : vector<1x8xf32> to vector<2x8xf32>
    %32 = arith.mulf %29, %31 : vector<2x8xf32>
    %33 = arith.addf %25, %32 : vector<2x8xf32>
    %34 = vector.extract_strided_slice %7 {offsets = [6, 0], sizes = [2, 8], strides = [1, 1]} : vector<28x8xf32> to vector<2x8xf32>
    %cst_14 = arith.constant dense<0.000000e+00> : vector<2x8xf32>
    %35 = tpu.matmul %29, %0, %cst_14 {dimension_numbers = #tpu.dot_dimension_numbers<[1], [0], [0], [1], [0, 0, 1, 1], [], []>, precision = #tpu.contract_precision<fp32>} : vector<2x8xf32>, vector<8x8xf32>, vector<2x8xf32> -> vector<2x8xf32>
    %36 = arith.addf %34, %35 : vector<2x8xf32>
    %37 = math.tanh %36 : vector<2x8xf32>
    %38 = vector.extract_strided_slice %1 {offsets = [3, 0], sizes = [1, 8], strides = [1, 1]} : vector<14x8xf32> to vector<1x8xf32>
    %39 = vector.broadcast %38 : vector<1x8xf32> to vector<2x8xf32>
    %40 = arith.mulf %37, %39 : vector<2x8xf32>
    %41 = arith.addf %33, %40 : vector<2x8xf32>
    %42 = vector.extract_strided_slice %7 {offsets = [8, 0], sizes = [2, 8], strides = [1, 1]} : vector<28x8xf32> to vector<2x8xf32>
    %cst_15 = arith.constant dense<0.000000e+00> : vector<2x8xf32>
    %43 = tpu.matmul %37, %0, %cst_15 {dimension_numbers = #tpu.dot_dimension_numbers<[1], [0], [0], [1], [0, 0, 1, 1], [], []>, precision = #tpu.contract_precision<fp32>} : vector<2x8xf32>, vector<8x8xf32>, vector<2x8xf32> -> vector<2x8xf32>
    %44 = arith.addf %42, %43 : vector<2x8xf32>
    %45 = math.tanh %44 : vector<2x8xf32>
    %46 = vector.extract_strided_slice %1 {offsets = [4, 0], sizes = [1, 8], strides = [1, 1]} : vector<14x8xf32> to vector<1x8xf32>
    %47 = vector.broadcast %46 : vector<1x8xf32> to vector<2x8xf32>
    %48 = arith.mulf %45, %47 : vector<2x8xf32>
    %49 = arith.addf %41, %48 : vector<2x8xf32>
    %50 = vector.extract_strided_slice %7 {offsets = [10, 0], sizes = [2, 8], strides = [1, 1]} : vector<28x8xf32> to vector<2x8xf32>
    %cst_16 = arith.constant dense<0.000000e+00> : vector<2x8xf32>
    %51 = tpu.matmul %45, %0, %cst_16 {dimension_numbers = #tpu.dot_dimension_numbers<[1], [0], [0], [1], [0, 0, 1, 1], [], []>, precision = #tpu.contract_precision<fp32>} : vector<2x8xf32>, vector<8x8xf32>, vector<2x8xf32> -> vector<2x8xf32>
    %52 = arith.addf %50, %51 : vector<2x8xf32>
    %53 = math.tanh %52 : vector<2x8xf32>
    %54 = vector.extract_strided_slice %1 {offsets = [5, 0], sizes = [1, 8], strides = [1, 1]} : vector<14x8xf32> to vector<1x8xf32>
    %55 = vector.broadcast %54 : vector<1x8xf32> to vector<2x8xf32>
    %56 = arith.mulf %53, %55 : vector<2x8xf32>
    %57 = arith.addf %49, %56 : vector<2x8xf32>
    %58 = vector.extract_strided_slice %7 {offsets = [12, 0], sizes = [2, 8], strides = [1, 1]} : vector<28x8xf32> to vector<2x8xf32>
    %cst_17 = arith.constant dense<0.000000e+00> : vector<2x8xf32>
    %59 = tpu.matmul %53, %0, %cst_17 {dimension_numbers = #tpu.dot_dimension_numbers<[1], [0], [0], [1], [0, 0, 1, 1], [], []>, precision = #tpu.contract_precision<fp32>} : vector<2x8xf32>, vector<8x8xf32>, vector<2x8xf32> -> vector<2x8xf32>
    %60 = arith.addf %58, %59 : vector<2x8xf32>
    %61 = math.tanh %60 : vector<2x8xf32>
    %62 = vector.extract_strided_slice %1 {offsets = [6, 0], sizes = [1, 8], strides = [1, 1]} : vector<14x8xf32> to vector<1x8xf32>
    %63 = vector.broadcast %62 : vector<1x8xf32> to vector<2x8xf32>
    %64 = arith.mulf %61, %63 : vector<2x8xf32>
    %65 = arith.addf %57, %64 : vector<2x8xf32>
    %66 = vector.extract_strided_slice %7 {offsets = [14, 0], sizes = [2, 8], strides = [1, 1]} : vector<28x8xf32> to vector<2x8xf32>
    %cst_18 = arith.constant dense<0.000000e+00> : vector<2x8xf32>
    %67 = tpu.matmul %61, %0, %cst_18 {dimension_numbers = #tpu.dot_dimension_numbers<[1], [0], [0], [1], [0, 0, 1, 1], [], []>, precision = #tpu.contract_precision<fp32>} : vector<2x8xf32>, vector<8x8xf32>, vector<2x8xf32> -> vector<2x8xf32>
    %68 = arith.addf %66, %67 : vector<2x8xf32>
    %69 = math.tanh %68 : vector<2x8xf32>
    %70 = vector.extract_strided_slice %1 {offsets = [7, 0], sizes = [1, 8], strides = [1, 1]} : vector<14x8xf32> to vector<1x8xf32>
    %71 = vector.broadcast %70 : vector<1x8xf32> to vector<2x8xf32>
    %72 = arith.mulf %69, %71 : vector<2x8xf32>
    %73 = arith.addf %65, %72 : vector<2x8xf32>
    %74 = vector.extract_strided_slice %7 {offsets = [16, 0], sizes = [2, 8], strides = [1, 1]} : vector<28x8xf32> to vector<2x8xf32>
    %cst_19 = arith.constant dense<0.000000e+00> : vector<2x8xf32>
    %75 = tpu.matmul %69, %0, %cst_19 {dimension_numbers = #tpu.dot_dimension_numbers<[1], [0], [0], [1], [0, 0, 1, 1], [], []>, precision = #tpu.contract_precision<fp32>} : vector<2x8xf32>, vector<8x8xf32>, vector<2x8xf32> -> vector<2x8xf32>
    %76 = arith.addf %74, %75 : vector<2x8xf32>
    %77 = math.tanh %76 : vector<2x8xf32>
    %78 = vector.extract_strided_slice %1 {offsets = [8, 0], sizes = [1, 8], strides = [1, 1]} : vector<14x8xf32> to vector<1x8xf32>
    %79 = vector.broadcast %78 : vector<1x8xf32> to vector<2x8xf32>
    %80 = arith.mulf %77, %79 : vector<2x8xf32>
    %81 = arith.addf %73, %80 : vector<2x8xf32>
    %82 = vector.extract_strided_slice %7 {offsets = [18, 0], sizes = [2, 8], strides = [1, 1]} : vector<28x8xf32> to vector<2x8xf32>
    %cst_20 = arith.constant dense<0.000000e+00> : vector<2x8xf32>
    %83 = tpu.matmul %77, %0, %cst_20 {dimension_numbers = #tpu.dot_dimension_numbers<[1], [0], [0], [1], [0, 0, 1, 1], [], []>, precision = #tpu.contract_precision<fp32>} : vector<2x8xf32>, vector<8x8xf32>, vector<2x8xf32> -> vector<2x8xf32>
    %84 = arith.addf %82, %83 : vector<2x8xf32>
    %85 = math.tanh %84 : vector<2x8xf32>
    %86 = vector.extract_strided_slice %1 {offsets = [9, 0], sizes = [1, 8], strides = [1, 1]} : vector<14x8xf32> to vector<1x8xf32>
    %87 = vector.broadcast %86 : vector<1x8xf32> to vector<2x8xf32>
    %88 = arith.mulf %85, %87 : vector<2x8xf32>
    %89 = arith.addf %81, %88 : vector<2x8xf32>
    %90 = vector.extract_strided_slice %7 {offsets = [20, 0], sizes = [2, 8], strides = [1, 1]} : vector<28x8xf32> to vector<2x8xf32>
    %cst_21 = arith.constant dense<0.000000e+00> : vector<2x8xf32>
    %91 = tpu.matmul %85, %0, %cst_21 {dimension_numbers = #tpu.dot_dimension_numbers<[1], [0], [0], [1], [0, 0, 1, 1], [], []>, precision = #tpu.contract_precision<fp32>} : vector<2x8xf32>, vector<8x8xf32>, vector<2x8xf32> -> vector<2x8xf32>
    %92 = arith.addf %90, %91 : vector<2x8xf32>
    %93 = math.tanh %92 : vector<2x8xf32>
    %94 = vector.extract_strided_slice %1 {offsets = [10, 0], sizes = [1, 8], strides = [1, 1]} : vector<14x8xf32> to vector<1x8xf32>
    %95 = vector.broadcast %94 : vector<1x8xf32> to vector<2x8xf32>
    %96 = arith.mulf %93, %95 : vector<2x8xf32>
    %97 = arith.addf %89, %96 : vector<2x8xf32>
    %98 = vector.extract_strided_slice %7 {offsets = [22, 0], sizes = [2, 8], strides = [1, 1]} : vector<28x8xf32> to vector<2x8xf32>
    %cst_22 = arith.constant dense<0.000000e+00> : vector<2x8xf32>
    %99 = tpu.matmul %93, %0, %cst_22 {dimension_numbers = #tpu.dot_dimension_numbers<[1], [0], [0], [1], [0, 0, 1, 1], [], []>, precision = #tpu.contract_precision<fp32>} : vector<2x8xf32>, vector<8x8xf32>, vector<2x8xf32> -> vector<2x8xf32>
    %100 = arith.addf %98, %99 : vector<2x8xf32>
    %101 = math.tanh %100 : vector<2x8xf32>
    %102 = vector.extract_strided_slice %1 {offsets = [11, 0], sizes = [1, 8], strides = [1, 1]} : vector<14x8xf32> to vector<1x8xf32>
    %103 = vector.broadcast %102 : vector<1x8xf32> to vector<2x8xf32>
    %104 = arith.mulf %101, %103 : vector<2x8xf32>
    %105 = arith.addf %97, %104 : vector<2x8xf32>
    %106 = vector.extract_strided_slice %7 {offsets = [24, 0], sizes = [2, 8], strides = [1, 1]} : vector<28x8xf32> to vector<2x8xf32>
    %cst_23 = arith.constant dense<0.000000e+00> : vector<2x8xf32>
    %107 = tpu.matmul %101, %0, %cst_23 {dimension_numbers = #tpu.dot_dimension_numbers<[1], [0], [0], [1], [0, 0, 1, 1], [], []>, precision = #tpu.contract_precision<fp32>} : vector<2x8xf32>, vector<8x8xf32>, vector<2x8xf32> -> vector<2x8xf32>
    %108 = arith.addf %106, %107 : vector<2x8xf32>
    %109 = math.tanh %108 : vector<2x8xf32>
    %110 = vector.extract_strided_slice %1 {offsets = [12, 0], sizes = [1, 8], strides = [1, 1]} : vector<14x8xf32> to vector<1x8xf32>
    %111 = vector.broadcast %110 : vector<1x8xf32> to vector<2x8xf32>
    %112 = arith.mulf %109, %111 : vector<2x8xf32>
    %113 = arith.addf %105, %112 : vector<2x8xf32>
    %114 = vector.extract_strided_slice %7 {offsets = [26, 0], sizes = [2, 8], strides = [1, 1]} : vector<28x8xf32> to vector<2x8xf32>
    %cst_24 = arith.constant dense<0.000000e+00> : vector<2x8xf32>
    %115 = tpu.matmul %109, %0, %cst_24 {dimension_numbers = #tpu.dot_dimension_numbers<[1], [0], [0], [1], [0, 0, 1, 1], [], []>, precision = #tpu.contract_precision<fp32>} : vector<2x8xf32>, vector<8x8xf32>, vector<2x8xf32> -> vector<2x8xf32>
    %116 = arith.addf %114, %115 : vector<2x8xf32>
    %117 = math.tanh %116 : vector<2x8xf32>
    %118 = vector.extract_strided_slice %1 {offsets = [13, 0], sizes = [1, 8], strides = [1, 1]} : vector<14x8xf32> to vector<1x8xf32>
    %119 = vector.broadcast %118 : vector<1x8xf32> to vector<2x8xf32>
    %120 = arith.mulf %117, %119 : vector<2x8xf32>
    %121 = arith.addf %113, %120 : vector<2x8xf32>
    %cst_25 = arith.constant dense<0.000000e+00> : vector<2xf32>
    %122 = vector.multi_reduction <add>, %121, %cst_25 [1] : vector<2x8xf32> to vector<2xf32>
    %123 = vector.shape_cast %122 : vector<2xf32> to vector<2x1xf32>
    %c0_26 = arith.constant 0 : index
    %c0_27 = arith.constant 0 : index
    %124 = vector.load %arg5[%c0_26, %c0_27] : memref<1x1xf32, #tpu.memory_space<vmem>>, vector<1x1xf32>
    %125 = vector.broadcast %124 : vector<1x1xf32> to vector<2x1xf32>
    %126 = arith.addf %123, %125 : vector<2x1xf32>
    %127 = arith.negf %126 : vector<2x1xf32>
    %128 = math.exp %127 : vector<2x1xf32>
    %cst_28 = arith.constant 1.000000e+00 : f32
    %129 = vector.broadcast %cst_28 : f32 to vector<2x1xf32>
    %130 = arith.addf %129, %128 : vector<2x1xf32>
    %131 = arith.divf %129, %130 : vector<2x1xf32>
    %c0_29 = arith.constant 0 : index
    %c0_30 = arith.constant 0 : index
    %132 = vector.load %arg6[%c0_29, %c0_30] : memref<2x1xf32, #tpu.memory_space<vmem>>, vector<2x1xf32>
    tpu.vector_store %arg6[%c0_29, %c0_30], %131 {strides = array<i32>} : memref<2x1xf32, #tpu.memory_space<vmem>>, vector<2x1xf32>,
    return
  }
}

</mosaic_0001>

<bundles_post_ra>
// kernel: tpu_custom_call.1
= control target key start
LH: loop header
LB: loop body
LE: loop exit
PB: predicated region body
PF: predicated region fallthrough
CT: control target
= control target key end

     0   :  { %vm53_vm0 = vcmask 1043456   ;;  %vm40_vm1 = vcmask 31744   ;;  %v7953_v39 = vmov 0.0   ;;  %vm7954_vm2 = vmmov 0   ;;  %s8497_s1 = inlined_call_operand.vmem [shape: f32[4,8], index: 1, kind: input, shape index: {}]   ;;  %s8498_s0 = inlined_call_operand.vmem [shape: f32[28,4], index: 0, kind: input, shape index: {}]   ;;  %s8499_s2 = inlined_call_operand.vmem [shape: f32[8,8], index: 2, kind: input, shape index: {}]   ;;  %s8500_s3 = inlined_call_operand.vmem [shape: f32[1,8], index: 3, kind: input, shape index: {}]   ;;  %s8501_s4 = inlined_call_operand.vmem [shape: f32[14,8], index: 4, kind: input, shape index: {}]   ;;  %s8502_s5 = inlined_call_operand.<no memory space> [shape: f32[1,1], index: 5, kind: input, shape index: {}]   ;;  %s8503_s6 = inlined_call_operand.vmem [shape: f32[2,1], index: 6, kind: output, shape index: {}]  }
   0x1   :  { %v32_v0 = vld [vmem:[%s8497_s1] sm:$0xf]  ;;  %v29_v2 = vld [vmem:[%s8498_s0 + $0x8] sm:$0xff]  ;;  %v30_v6 = vld [vmem:[%s8498_s0 + $0x10] sm:$0xff]  ;;  %vm632_vm3 = vcmask 64512   ;;  %vm7100_vm4 = vcmask 58368  }
   0x2   :  { %v28_v1 = vld [vmem:[%s8498_s0] sm:$0xff]  ;;  %v55_v3 = vsel %vm53_vm0, %v32_v0, 0  ;;  %v45_v5 = vsel %vm40_vm1, %v29_v2, 0  ;;  %v31_v7 = vld [vmem:[%s8498_s0 + $0x18] sm:$0xf]  ;;  %v48_v11 = vsel %vm40_vm1, %v30_v6, 0 }
   0x3   :  { %v42_v4 = vsel %vm40_vm1, %v28_v1, 0  ;;  %v8005_v8 = vand.u32 4294901760, %v55_v3  ;;  %v8009_v10 = vand.u32 4294901760, %v45_v5  ;;  %v8011_v12 = vand.u32 4294901760, %v48_v11  ;;  %v25_v23 = vld [vmem:[%s8499_s2] sm:$0xff] }
   0x4   :  { %v8007_v9 = vand.u32 4294901760, %v42_v4  ;;  %v51_v13 = vsel %vm40_vm1, %v31_v7, 0  ;;  %v8026_v30 = vand.u32 4294901760, %v25_v23  ;;  %v7124_v42 = vld [vmem:[%s8500_s3] ss:$0 sm:$0xff]  ;;  %vm7118_vm5 = vcmask 1024  }
   0x5   :  { %7325 = vmatprep.subr.mxu1 %v8005_v8  ;;  %v165_v15 = vsub.f32 %v55_v3, %v8005_v8  ;;  %v134_v16 = vsub.f32 %v45_v5, %v8009_v10  ;;  %v8018_v17 = vand.u32 4294901760, %v51_v13  ;;  %v144_v18 = vsub.f32 %v48_v11, %v8011_v12 }
   0x6   :  { %v124_v14 = vsub.f32 %v42_v4, %v8007_v9  ;;  %7335 = vmatprep.mubr.f32.mxu0 %v8007_v9  ;;  %7326 = vmatpush3.msra.mxu1 %v8005_v8  ;;  %v8029_v37 = vsub.f32 %v25_v23, %v8026_v30  ;;  %v1084_v23 = vlaneseq }
   0x7   :  { %v166_v20 = vand.u32 4294901760, %v165_v15  ;;  %v135_v21 = vand.u32 4294901760, %v134_v16  ;;  %v154_v22 = vsub.f32 %v51_v13, %v8018_v17  ;;  %v145_v24 = vand.u32 4294901760, %v144_v18 }
   0x8   :  { %v125_v19 = vand.u32 4294901760, %v124_v14  ;;  %v8035_v38 = vand.u32 4294901760, %v8029_v37 }
   0x9   :  { %v167_v26 = vsub.f32 %v165_v15, %v166_v20  ;;  %v136_v27 = vsub.f32 %v134_v16, %v135_v21  ;;  %v155_v28 = vand.u32 4294901760, %v154_v22  ;;  %v146_v29 = vsub.f32 %v144_v18, %v145_v24 }
   0xa   :  { %v126_v25 = vsub.f32 %v124_v14, %v125_v19  ;;  %v716_v40 = vsub.f32 %v8029_v37, %v8035_v38 }
   0xb   :  { %v168_v32 = vand.u32 4294901760, %v167_v26  ;;  %v137_v33 = vand.u32 4294901760, %v136_v27  ;;  %v156_v34 = vsub.f32 %v154_v22, %v155_v28  ;;  %v147_v35 = vand.u32 4294901760, %v146_v29 }
   0xc   :  { %v127_v31 = vand.u32 4294901760, %v126_v25  ;;  %v8045_v41 = vand.u32 4294901760, %v716_v40  ;;  %v8131_v25 = vshrl.u32 %v1084_v23, 7 }
   0xd   :  { %7333 = vmatprep.subr.mxu0 %v168_v32  ;;  %7793 = vmatprep.subr.mxu1 %v168_v32  ;;  %v157_v36 = vand.u32 4294901760, %v156_v34 }
   0xe   :  { %7327 = vmatprep.mubr.f32.mxu1 %v127_v31  ;;  %7334 = vmatpush3.msra.mxu0 %v168_v32  ;;  %v1546_v26 = vsub.s32 1, %v8131_v25  ;;  %v1086_v27 = vsub.s32 0, %v8131_v25 }
   0xf   :  { %7328 = vmatmul.mubr.f32.vlgmr.msra.gmra.mrb[0].mxu1 %v137_v33  ;;  %7336 = vmatmul.mubr.f32.vlgmr.msra.gmra.mrb[0].mxu0 %v8009_v10 }
  0x10   :  { %7794 = vmatpush3.msra.mxu1 %v168_v32  ;;  %7341 = vmatprep.subr.mxu0 %v165_v15 }
  0x11   :  { %7330 = vmatprep.mubr.f32.mxu1 %v147_v35  ;;  %7342 = vmatpush3.msra.mxu0 %v165_v15 }
  0x12   :  { %7343 = vmatprep.mubr.f32.mxu0 %v124_v14  ;;  %7349 = vmatprep.subr.mxu0 %v8005_v8 }
  0x13   :  { %7331 = vmatmul.mubr.f32.gmra.mrb[2].mxu1 %v157_v36  ;;  %7373 = vmatprep.subr.mxu1 %v7953_v39 }
  0x14   :  { %7338 = vmatprep.mubr.f32.mxu1 %v8011_v12 }
  0x17   :  { %7344 = vmatmul.mubr.f32.vlgmr.msra.gmra.mrb[0].mxu0 %v134_v16 }
  0x18   :  { %7350 = vmatpush3.msra.mxu0 %v8005_v8  ;;  %7346 = vmatprep.mubr.f32.mxu0 %v144_v18 }
  0x19   :  { %7357 = vmatprep.subr.mxu0 %v166_v20 }
  0x1b   :  { %7339 = vmatmul.mubr.f32.vlgmr.msra.gmra.mrb[2].mxu1 %v8018_v17  ;;  %7347 = vmatmul.mubr.f32.gmra.mrb[2].mxu0 %v154_v22 }
  0x1c   :  { %7374 = vmatpush3.msra.mxu1 %v8026_v30  ;;  %7375 = vmatprep.mubr.msk.f32.mxu1 %vm7954_vm2, %v7953_v39 }
  0x1d   :  { %7378 = vmatprep.subr.mxu1 %v7953_v39  ;;  %7351 = vmatprep.mubr.f32.mxu0 %v125_v19 }
  0x1f   :  { %7376 = vmatmul.mubr.f32.vlgmr.msra.gmra.mrb[4].mxu1 %v7953_v39  ;;  %7352 = vmatmul.mubr.f32.vlgmr.msra.gmra.mrb[0].mxu0 %v135_v21 }
  0x20   :  { %7379 = vmatpush3.msra.mxu1 %v8045_v41  ;;  %7380 = vmatprep.mubr.msk.f32.mxu1 %vm7954_vm2, %v7953_v39 }
  0x21   :  { %7383 = vmatprep.subr.mxu1 %v7953_v39  ;;  %7358 = vmatpush3.msra.mxu0 %v166_v20 }
  0x22   :  { %7354 = vmatprep.mubr.f32.mxu0 %v145_v24  ;;  %7365 = vmatprep.subr.mxu0 %v8005_v8 }
  0x23   :  { %7381 = vmatmul.mubr.f32.vlgmr.msra.gmra.mrb[6].mxu1 %v7953_v39  ;;  %7355 = vmatmul.mubr.f32.gmra.mrb[2].mxu0 %v155_v28  ;;  %v8138_v28 = vld [vmem:[%s8501_s4] sm:$0xff] }
  0x24   :  { %7384 = vmatpush3.msra.mxu1 %v8029_v37  ;;  %7385 = vmatprep.mubr.msk.f32.mxu1 %vm7954_vm2, %v7953_v39  ;;  %v1547_v29 = vrot.slane %v8138_v28, %v1546_v26  ;;  %v1087_v31 = vrot.slane %v8138_v28, %v1086_v27 }
  0x25   :  { %7388 = vmatprep.subr.mxu1 %v7953_v39  ;;  %7359 = vmatprep.mubr.f32.mxu0 %v8007_v9 }
  0x27   :  { %7386 = vmatmul.mubr.f32.vlgmr.msra.gmra.mrb[8].mxu1 %v7953_v39  ;;  %7360 = vmatmul.mubr.f32.vlgmr.msra.gmra.mrb[0].mxu0 %v8009_v10 }
  0x28   :  { %7389 = vmatpush3.msra.mxu1 %v8026_v30  ;;  %7390 = vmatprep.mubr.msk.f32.mxu1 %vm7954_vm2, %v7953_v39 }
  0x29   :  { %7393 = vmatprep.subr.mxu1 %v7953_v39  ;;  %7366 = vmatpush3.msra.mxu0 %v8005_v8 }
  0x2a   :  { %7362 = vmatprep.mubr.f32.mxu0 %v8011_v12  ;;  %7433 = vmatprep.subr.mxu0 %v7953_v39 }
  0x2b   :  { %7391 = vmatmul.mubr.f32.vlgmr.msra.gmra.mrb[10].mxu1 %v7953_v39  ;;  %7363 = vmatmul.mubr.f32.gmra.mrb[2].mxu0 %v8018_v17 }
  0x2c   :  { %7394 = vmatpush3.msra.mxu1 %v8035_v38  ;;  %7395 = vmatprep.mubr.msk.f32.mxu1 %vm7954_vm2, %v7953_v39 }
  0x2d   :  { %7398 = vmatprep.subr.mxu1 %v7953_v39  ;;  %7367 = vmatprep.mubr.f32.mxu0 %v8007_v9 }
  0x2f   :  { %7396 = vmatmul.mubr.f32.vlgmr.msra.gmra.mrb[12].mxu1 %v7953_v39  ;;  %7368 = vmatmul.mubr.f32.vlgmr.msra.gmra.mrb[0].mxu0 %v8009_v10 }
  0x30   :  { %7399 = vmatpush3.msra.mxu1 %v8026_v30  ;;  %7400 = vmatprep.mubr.msk.f32.mxu1 %vm7954_vm2, %v7953_v39 }
  0x31   :  { %7403 = vmatprep.subr.mxu1 %v7953_v39  ;;  %7370 = vmatprep.mubr.f32.mxu0 %v8011_v12 }
  0x32   :  { %7434 = vmatpush3.msra.mxu0 %v8026_v30 }
  0x33   :  { %7401 = vmatmul.mubr.f32.vlgmr.msra.gmra.mrb[14].mxu1 %v7953_v39  ;;  %7438 = vmatprep.subr.mxu0 %v7953_v39 }
  0x34   :  { %7404 = vmatpush3.msra.mxu1 %v8026_v30  ;;  %7405 = vmatprep.mubr.msk.f32.mxu1 %vm7954_vm2, %v7953_v39 }
  0x35   :  { %7371 = vmatmul.mubr.f32.gmra.mrb[2].mxu0 %v8018_v17  ;;  %7408 = vmatprep.subr.mxu1 %v7953_v39 }
  0x36   :  { %7435 = vmatprep.mubr.msk.f32.mxu0 %vm7954_vm2, %v7953_v39 }
  0xe2   :  { %v7329_v43 = vpop.f32.mrb[0].mxu1 }
  0xe3   :  { %v140_v44 = vadd.f32 %v7329_v43, %v7124_v42  ;;  %v129_v45 = vpop.f32.mrb[1].mxu1 }
  0xe4   :  { %v130_v0 = vadd.f32 %v7124_v42, %v129_v45 }
  0xee   :  { %v7340_v46 = vpop.f32.mrb[2].mxu1 }
  0xef   :  { %v7799_v47 = vadd.f32 %v7340_v46, %v7124_v42  ;;  %v247_v48 = vpop.f32.mrb[3].mxu1 }
  0xf0   :  { %v7801_v49 = vadd.f32 %v7124_v42, %v247_v48 }
  0xf2   :  { %v708_v50 = vpop.f32.mrb[4].mxu1 }
  0xf3   :  { %v7377_v51 = vpop.f32.mrb[5].mxu1 }
  0xf6   :  { %v784_v52 = vpop.f32.mrb[6].mxu1 }
  0xf7   :  { %v785_v53 = vadd.f32 %v784_v52, %v708_v50  ;;  %v7382_v54 = vpop.f32.mrb[7].mxu1  ;;  %v2010_v52 = vsub.s32 2, %v8131_v25 }
  0xfa   :  { %v858_v55 = vpop.f32.mrb[8].mxu1 }
  0xfb   :  { %v859_v56 = vadd.f32 %v858_v55, %v785_v53  ;;  %v7387_v57 = vpop.f32.mrb[9].mxu1  ;;  %v2011_v53 = vrot.slane %v8138_v28, %v2010_v52 }
  0xfe   :  { %v932_v58 = vpop.f32.mrb[10].mxu1 }
  0xff   :  { %v933_v59 = vadd.f32 %v932_v58, %v859_v56  ;;  %v7392_v60 = vpop.f32.mrb[11].mxu1 }
 0x102   :  { %v1006_v61 = vpop.f32.mrb[12].mxu1  ;;  %v7369_v1 = vpop.f32.mrb[0].mxu0 }
 0x103   :  { %v1007_v62 = vadd.f32 %v1006_v61, %v933_v59  ;;  %v7397_v63 = vpop.f32.mrb[13].mxu1  ;;  %v8096_v2 = vadd.f32 %v7369_v1, %v140_v44  ;;  %v610_v3 = vpop.f32.mrb[1].mxu0 }
 0x104   :  { %v8098_v4 = vadd.f32 %v610_v3, %v130_v0 }
 0x106   :  { %v1078_v5 = vpop.f32.mrb[14].mxu1 }
 0x107   :  { %v1079_v6 = vadd.f32 %v1078_v5, %v1007_v62  ;;  %v7402_v7 = vpop.f32.mrb[15].mxu1 }
 0x108   :  { %v7372_v8 = vpop.f32.mrb[2].mxu0  ;;  %v2474_v7 = vsub.s32 3, %v8131_v25 }
 0x109   :  { %v1082_v9 = vadd.f32 %v8098_v4, %v1079_v6  ;;  %v8101_v10 = vadd.f32 %v7799_v47, %v7372_v8  ;;  %v622_v11 = vpop.f32.mrb[3].mxu0 }
 0x10a   :  { %v8103_v12 = vadd.f32 %v7801_v49, %v622_v11  ;;  %v2475_v8 = vrot.slane %v8138_v28, %v2474_v7 }
 0x10b   :  { %7921 = vtanh.f32 %v1082_v9 }
 0x115   :  { %v7922_v13 = vpop.eup %7921 }
 0x116   :  { %v1091_v14 = vsel %vm632_vm3, %v7922_v13, 0  ;;  %v1088_v35 = vmul.f32 %v7922_v13, %v1087_v31 }
 0x117   :  { %v1159_v15 = vand.u32 4294901760, %v1091_v14 }
 0x119   :  { %v1160_v16 = vsub.f32 %v1091_v14, %v1159_v15 }
 0x11b   :  { %v1161_v17 = vand.u32 4294901760, %v1160_v16 }
 0x11d   :  { %v1162_v18 = vsub.f32 %v1160_v16, %v1161_v17 }
 0x11f   :  { %v1163_v19 = vand.u32 4294901760, %v1162_v18 }
 0x121   :  { %7406 = vmatmul.mubr.f32.vlgmr.msra.gmra.mrb[16].mxu1 %v1163_v19 }
 0x122   :  { %7409 = vmatpush3.msra.mxu1 %v8045_v41  ;;  %7410 = vmatprep.mubr.msk.f32.mxu1 %vm7954_vm2, %v7953_v39 }
 0x123   :  { %7413 = vmatprep.subr.mxu1 %v7953_v39 }
 0x129   :  { %7411 = vmatmul.mubr.f32.vlgmr.msra.gmra.mrb[16].mxu1 %v1159_v15 }
 0x12a   :  { %7414 = vmatpush3.msra.mxu1 %v8029_v37  ;;  %7415 = vmatprep.mubr.msk.f32.mxu1 %vm7954_vm2, %v7953_v39 }
 0x12b   :  { %7418 = vmatprep.subr.mxu1 %v7953_v39 }
 0x131   :  { %7416 = vmatmul.mubr.f32.vlgmr.msra.gmra.mrb[16].mxu1 %v1160_v16 }
 0x132   :  { %7419 = vmatpush3.msra.mxu1 %v8026_v30  ;;  %7420 = vmatprep.mubr.msk.f32.mxu1 %vm7954_vm2, %v7953_v39 }
 0x133   :  { %7423 = vmatprep.subr.mxu1 %v7953_v39 }
 0x139   :  { %7421 = vmatmul.mubr.f32.vlgmr.msra.gmra.mrb[16].mxu1 %v1161_v17 }
 0x13a   :  { %7424 = vmatpush3.msra.mxu1 %v8035_v38  ;;  %7425 = vmatprep.mubr.msk.f32.mxu1 %vm7954_vm2, %v7953_v39 }
 0x13b   :  { %7428 = vmatprep.subr.mxu1 %v7953_v39 }
 0x141   :  { %7426 = vmatmul.mubr.f32.vlgmr.msra.gmra.mrb[16].mxu1 %v1159_v15 }
 0x142   :  { %7429 = vmatpush3.msra.mxu1 %v8026_v30  ;;  %7430 = vmatprep.mubr.msk.f32.mxu1 %vm7954_vm2, %v7953_v39 }
 0x143   :  { %7463 = vmatprep.subr.mxu1 %v7953_v39 }
 0x149   :  { %7431 = vmatmul.mubr.f32.vlgmr.msra.gmra.mrb[16].mxu1 %v1159_v15 }
 0x14a   :  { %7464 = vmatpush3.msra.mxu1 %v8026_v30  ;;  %7465 = vmatprep.mubr.msk.f32.mxu1 %vm7954_vm2, %v7953_v39 }
 0x14b   :  { %7468 = vmatprep.subr.mxu1 %v7953_v39 }
 0x21c   :  { %v1535_v20 = vpop.f32.mrb[16].mxu1 }
 0x21d   :  { %v1540_v21 = vrot.slane %v1535_v20, 6  ;;  %v7432_v22 = vpop.f32.mrb[17].mxu1 }
 0x21f   :  { %v1542_v24 = vadd.f32 %v8098_v4, %v1540_v21 }
 0x221   :  { %7923 = vtanh.f32 %v1542_v24 }
 0x22b   :  { %v7924_v32 = vpop.eup %7923 }
 0x22c   :  { %v1548_v33 = vmul.f32 %v7924_v32, %v1547_v29  ;;  %v1554_v34 = vrot.slane %v7924_v32, 2 }
 0x22e   :  { %v1550_v36 = vrot.slane %v1548_v33, 2  ;;  %v1555_v40 = vsel %vm632_vm3, %v1554_v34, 0 }
 0x22f   :  { %v1623_v42 = vand.u32 4294901760, %v1555_v40 }
 0x230   :  { %v1552_v43 = vadd.f32 %v1550_v36, %v1088_v35 }
 0x231   :  { %v1624_v44 = vsub.f32 %v1555_v40, %v1623_v42 }
 0x233   :  { %v1625_v45 = vand.u32 4294901760, %v1624_v44 }
 0x235   :  { %v1626_v46 = vsub.f32 %v1624_v44, %v1625_v45 }
 0x237   :  { %v1627_v47 = vand.u32 4294901760, %v1626_v46 }
 0x239   :  { %7436 = vmatmul.mubr.f32.vlgmr.msra.gmra.mrb[4].mxu0 %v1627_v47 }
 0x23a   :  { %7439 = vmatpush3.msra.mxu0 %v8045_v41  ;;  %7440 = vmatprep.mubr.msk.f32.mxu0 %vm7954_vm2, %v7953_v39 }
 0x23b   :  { %7443 = vmatprep.subr.mxu0 %v7953_v39 }
 0x241   :  { %7441 = vmatmul.mubr.f32.vlgmr.msra.gmra.mrb[4].mxu0 %v1623_v42 }
 0x242   :  { %7444 = vmatpush3.msra.mxu0 %v8029_v37  ;;  %7445 = vmatprep.mubr.msk.f32.mxu0 %vm7954_vm2, %v7953_v39 }
 0x243   :  { %7448 = vmatprep.subr.mxu0 %v7953_v39 }
 0x249   :  { %7446 = vmatmul.mubr.f32.vlgmr.msra.gmra.mrb[4].mxu0 %v1624_v44 }
 0x24a   :  { %7449 = vmatpush3.msra.mxu0 %v8026_v30  ;;  %7450 = vmatprep.mubr.msk.f32.mxu0 %vm7954_vm2, %v7953_v39 }
 0x24b   :  { %7453 = vmatprep.subr.mxu0 %v7953_v39 }
 0x251   :  { %7451 = vmatmul.mubr.f32.vlgmr.msra.gmra.mrb[4].mxu0 %v1625_v45 }
 0x252   :  { %7454 = vmatpush3.msra.mxu0 %v8035_v38  ;;  %7455 = vmatprep.mubr.msk.f32.mxu0 %vm7954_vm2, %v7953_v39 }
 0x253   :  { %7458 = vmatprep.subr.mxu0 %v7953_v39 }
 0x259   :  { %7456 = vmatmul.mubr.f32.vlgmr.msra.gmra.mrb[4].mxu0 %v1623_v42 }
 0x25a   :  { %7459 = vmatpush3.msra.mxu0 %v8026_v30  ;;  %7460 = vmatprep.mubr.msk.f32.mxu0 %vm7954_vm2, %v7953_v39 }
 0x25b   :  { %7493 = vmatprep.subr.mxu0 %v7953_v39 }
 0x261   :  { %7461 = vmatmul.mubr.f32.vlgmr.msra.gmra.mrb[4].mxu0 %v1623_v42 }
 0x262   :  { %7494 = vmatpush3.msra.mxu0 %v8026_v30  ;;  %7495 = vmatprep.mubr.msk.f32.mxu0 %vm7954_vm2, %v7953_v39 }
 0x263   :  { %7503 = vmatprep.subr.mxu0 %v7953_v39 }
 0x334   :  { %v1999_v48 = vpop.f32.mrb[4].mxu0 }
 0x335   :  { %v2004_v49 = vrot.slane %v1999_v48, 4  ;;  %v7462_v50 = vpop.f32.mrb[5].mxu0  ;;  %v2935_v48 = vsub.s32 4, %v8131_v25 }
 0x337   :  { %v2006_v51 = vadd.f32 %v8098_v4, %v2004_v49  ;;  %v2936_v49 = vrot.slane %v8138_v28, %v2935_v48 }
 0x339   :  { %7925 = vtanh.f32 %v2006_v51 }
 0x343   :  { %v7926_v54 = vpop.eup %7925 }
 0x344   :  { %v2012_v55 = vmul.f32 %v7926_v54, %v2011_v53  ;;  %v2018_v56 = vrot.slane %v7926_v54, 4 }
 0x346   :  { %v2014_v57 = vrot.slane %v2012_v55, 4  ;;  %v2019_v58 = vsel %vm632_vm3, %v2018_v56, 0 }
 0x347   :  { %v2087_v59 = vand.u32 4294901760, %v2019_v58 }
 0x348   :  { %v2016_v60 = vadd.f32 %v2014_v57, %v1552_v43 }
 0x349   :  { %v2088_v61 = vsub.f32 %v2019_v58, %v2087_v59 }
 0x34b   :  { %v2089_v62 = vand.u32 4294901760, %v2088_v61 }
 0x34d   :  { %v2090_v63 = vsub.f32 %v2088_v61, %v2089_v62 }
 0x34f   :  { %v2091_v0 = vand.u32 4294901760, %v2090_v63 }
 0x351   :  { %7466 = vmatmul.mubr.f32.vlgmr.msra.gmra.mrb[18].mxu1 %v2091_v0  ;;  %v3395_v0 = vsub.s32 5, %v8131_v25 }
 0x352   :  { %7469 = vmatpush3.msra.mxu1 %v8045_v41  ;;  %7470 = vmatprep.mubr.msk.f32.mxu1 %vm7954_vm2, %v7953_v39 }
 0x353   :  { %7473 = vmatprep.subr.mxu1 %v7953_v39 }
 0x359   :  { %7471 = vmatmul.mubr.f32.vlgmr.msra.gmra.mrb[18].mxu1 %v2087_v59 }
 0x35a   :  { %7474 = vmatpush3.msra.mxu1 %v8029_v37  ;;  %7475 = vmatprep.mubr.msk.f32.mxu1 %vm7954_vm2, %v7953_v39 }
 0x35b   :  { %7478 = vmatprep.subr.mxu1 %v7953_v39 }
 0x361   :  { %7476 = vmatmul.mubr.f32.vlgmr.msra.gmra.mrb[18].mxu1 %v2088_v61 }
 0x362   :  { %7479 = vmatpush3.msra.mxu1 %v8026_v30  ;;  %7480 = vmatprep.mubr.msk.f32.mxu1 %vm7954_vm2, %v7953_v39 }
 0x363   :  { %7483 = vmatprep.subr.mxu1 %v7953_v39 }
 0x369   :  { %7481 = vmatmul.mubr.f32.vlgmr.msra.gmra.mrb[18].mxu1 %v2089_v62 }
 0x36a   :  { %7484 = vmatpush3.msra.mxu1 %v8035_v38  ;;  %7485 = vmatprep.mubr.msk.f32.mxu1 %vm7954_vm2, %v7953_v39 }
 0x36b   :  { %7488 = vmatprep.subr.mxu1 %v7953_v39 }
 0x371   :  { %7486 = vmatmul.mubr.f32.vlgmr.msra.gmra.mrb[18].mxu1 %v2087_v59 }
 0x372   :  { %7489 = vmatpush3.msra.mxu1 %v8026_v30  ;;  %7490 = vmatprep.mubr.msk.f32.mxu1 %vm7954_vm2, %v7953_v39 }
 0x373   :  { %7498 = vmatprep.subr.mxu1 %v7953_v39 }
 0x379   :  { %7491 = vmatmul.mubr.f32.vlgmr.msra.gmra.mrb[18].mxu1 %v2087_v59 }
 0x37a   :  { %7499 = vmatpush3.msra.mxu1 %v8045_v41  ;;  %7500 = vmatprep.mubr.msk.f32.mxu1 %vm7954_vm2, %v7953_v39 }
 0x37b   :  { %7508 = vmatprep.subr.mxu1 %v7953_v39 }
 0x44c   :  { %v2463_v1 = vpop.f32.mrb[18].mxu1 }
 0x44d   :  { %v2468_v3 = vrot.slane %v2463_v1, 2  ;;  %v7492_v5 = vpop.f32.mrb[19].mxu1  ;;  %v3396_v1 = vrot.slane %v8138_v28, %v3395_v0 }
 0x44f   :  { %v2470_v6 = vadd.f32 %v8098_v4, %v2468_v3 }
 0x451   :  { %7927 = vtanh.f32 %v2470_v6 }
 0x45b   :  { %v7928_v9 = vpop.eup %7927 }
 0x45c   :  { %v2482_v11 = vrot.slane %v7928_v9, 6  ;;  %v2476_v13 = vmul.f32 %v7928_v9, %v2475_v8 }
 0x45e   :  { %v2483_v14 = vsel %vm632_vm3, %v2482_v11, 0  ;;  %v2478_v15 = vrot.slane %v2476_v13, 6 }
 0x45f   :  { %v2551_v16 = vand.u32 4294901760, %v2483_v14 }
 0x460   :  { %v2480_v17 = vadd.f32 %v2478_v15, %v2016_v60 }
 0x461   :  { %v2552_v18 = vsub.f32 %v2483_v14, %v2551_v16  ;;  %7501 = vmatmul.mubr.f32.vlgmr.msra.gmra.mrb[20].mxu1 %v2551_v16 }
 0x462   :  { %7509 = vmatpush3.msra.mxu1 %v8026_v30  ;;  %7510 = vmatprep.mubr.msk.f32.mxu1 %vm7954_vm2, %v7953_v39 }
 0x463   :  { %v2553_v4 = vand.u32 4294901760, %v2552_v18  ;;  %7518 = vmatprep.subr.mxu1 %v7953_v39 }
 0x465   :  { %7511 = vmatmul.mubr.f32.vlgmr.msra.gmra.mrb[22].mxu1 %v2553_v4  ;;  %v2554_v19 = vsub.f32 %v2552_v18, %v2553_v4 }
 0x466   :  { %7519 = vmatpush3.msra.mxu1 %v8026_v30  ;;  %7520 = vmatprep.mubr.msk.f32.mxu1 %vm7954_vm2, %v7953_v39 }
 0x467   :  { %v2555_v20 = vand.u32 4294901760, %v2554_v19  ;;  %7553 = vmatprep.subr.mxu1 %v7953_v39 }
 0x469   :  { %7496 = vmatmul.mubr.f32.vlgmr.msra.gmra.mrb[6].mxu0 %v2555_v20  ;;  %7521 = vmatmul.mubr.f32.vlgmr.msra.gmra.mrb[24].mxu1 %v2551_v16 }
 0x46a   :  { %7504 = vmatpush3.msra.mxu0 %v8029_v37  ;;  %7505 = vmatprep.mubr.msk.f32.mxu0 %vm7954_vm2, %v7953_v39 }
 0x46b   :  { %7513 = vmatprep.subr.mxu0 %v7953_v39  ;;  %7554 = vmatpush3.msra.mxu1 %v8026_v30 }
 0x46c   :  { %7555 = vmatprep.mubr.msk.f32.mxu1 %vm7954_vm2, %v7953_v39  ;;  %7558 = vmatprep.subr.mxu1 %v7953_v39 }
 0x46d   :  { %7506 = vmatmul.mubr.f32.vlgmr.msra.gmra.mrb[8].mxu0 %v2552_v18 }
 0x46e   :  { %7514 = vmatpush3.msra.mxu0 %v8035_v38  ;;  %7515 = vmatprep.mubr.msk.f32.mxu0 %vm7954_vm2, %v7953_v39 }
 0x46f   :  { %7523 = vmatprep.subr.mxu0 %v7953_v39 }
 0x471   :  { %7516 = vmatmul.mubr.f32.vlgmr.msra.gmra.mrb[10].mxu0 %v2551_v16 }
 0x472   :  { %7524 = vmatpush3.msra.mxu0 %v8026_v30  ;;  %7525 = vmatprep.mubr.msk.f32.mxu0 %vm7954_vm2, %v7953_v39 }
 0x473   :  { %7528 = vmatprep.subr.mxu0 %v7953_v39 }
 0x534   :  { %v2633_v21 = vpop.f32.mrb[20].mxu1 }
 0x535   :  { %v7502_v22 = vpop.f32.mrb[21].mxu1 }
 0x538   :  { %v2781_v23 = vpop.f32.mrb[22].mxu1 }
 0x539   :  { %v7512_v24 = vpop.f32.mrb[23].mxu1 }
 0x53c   :  { %v2557_v29 = vpop.f32.mrb[6].mxu0  ;;  %v2927_v31 = vpop.f32.mrb[24].mxu1 }
 0x53d   :  { %v2634_v32 = vadd.f32 %v2633_v21, %v2557_v29  ;;  %v7497_v33 = vpop.f32.mrb[7].mxu0  ;;  %v7522_v34 = vpop.f32.mrb[25].mxu1  ;;  %v3859_v21 = vsub.s32 6, %v8131_v25 }
 0x53f   :  { %v3860_v22 = vrot.slane %v8138_v28, %v3859_v21 }
 0x540   :  { %v2707_v35 = vpop.f32.mrb[8].mxu0 }
 0x541   :  { %v2708_v36 = vadd.f32 %v2707_v35, %v2634_v32  ;;  %v7507_v40 = vpop.f32.mrb[9].mxu0 }
 0x543   :  { %v2782_v42 = vadd.f32 %v2781_v23, %v2708_v36 }
 0x544   :  { %v2855_v43 = vpop.f32.mrb[10].mxu0 }
 0x545   :  { %v2856_v44 = vadd.f32 %v2855_v43, %v2782_v42  ;;  %v7517_v45 = vpop.f32.mrb[11].mxu0 }
 0x547   :  { %v2928_v46 = vadd.f32 %v2927_v31, %v2856_v44 }
 0x549   :  { %v2931_v47 = vadd.f32 %v8096_v2, %v2928_v46 }
 0x54b   :  { %7929 = vtanh.f32 %v2931_v47  ;;  %v4323_v47 = vsub.s32 7, %v8131_v25 }
 0x555   :  { %v7930_v50 = vpop.eup %7929 }
 0x556   :  { %v2940_v51 = vsel %vm632_vm3, %v7930_v50, 0  ;;  %v2937_v53 = vmul.f32 %v7930_v50, %v2936_v49  ;;  %v4324_v49 = vrot.slane %v8138_v28, %v4323_v47 }
 0x557   :  { %v3008_v54 = vand.u32 4294901760, %v2940_v51 }
 0x558   :  { %v2938_v55 = vadd.f32 %v2937_v53, %v2480_v17 }
 0x559   :  { %v3009_v56 = vsub.f32 %v2940_v51, %v3008_v54 }
 0x55b   :  { %v3010_v57 = vand.u32 4294901760, %v3009_v56 }
 0x55d   :  { %v3011_v58 = vsub.f32 %v3009_v56, %v3010_v57 }
 0x55f   :  { %v3012_v59 = vand.u32 4294901760, %v3011_v58 }
 0x561   :  { %7526 = vmatmul.mubr.f32.vlgmr.msra.gmra.mrb[12].mxu0 %v3012_v59 }
 0x562   :  { %7529 = vmatpush3.msra.mxu0 %v8045_v41  ;;  %7530 = vmatprep.mubr.msk.f32.mxu0 %vm7954_vm2, %v7953_v39 }
 0x563   :  { %7533 = vmatprep.subr.mxu0 %v7953_v39 }
 0x569   :  { %7531 = vmatmul.mubr.f32.vlgmr.msra.gmra.mrb[12].mxu0 %v3008_v54 }
 0x56a   :  { %7534 = vmatpush3.msra.mxu0 %v8029_v37  ;;  %7535 = vmatprep.mubr.msk.f32.mxu0 %vm7954_vm2, %v7953_v39 }
 0x56b   :  { %7538 = vmatprep.subr.mxu0 %v7953_v39 }
 0x571   :  { %7536 = vmatmul.mubr.f32.vlgmr.msra.gmra.mrb[12].mxu0 %v3009_v56 }
 0x572   :  { %7539 = vmatpush3.msra.mxu0 %v8026_v30  ;;  %7540 = vmatprep.mubr.msk.f32.mxu0 %vm7954_vm2, %v7953_v39 }
 0x573   :  { %7543 = vmatprep.subr.mxu0 %v7953_v39 }
 0x579   :  { %7541 = vmatmul.mubr.f32.vlgmr.msra.gmra.mrb[12].mxu0 %v3010_v57 }
 0x57a   :  { %7544 = vmatpush3.msra.mxu0 %v8035_v38  ;;  %7545 = vmatprep.mubr.msk.f32.mxu0 %vm7954_vm2, %v7953_v39 }
 0x57b   :  { %7548 = vmatprep.subr.mxu0 %v7953_v39 }
 0x581   :  { %7546 = vmatmul.mubr.f32.vlgmr.msra.gmra.mrb[12].mxu0 %v3008_v54 }
 0x582   :  { %7549 = vmatpush3.msra.mxu0 %v8026_v30  ;;  %7550 = vmatprep.mubr.msk.f32.mxu0 %vm7954_vm2, %v7953_v39 }
 0x583   :  { %7583 = vmatprep.subr.mxu0 %v7953_v39 }
 0x589   :  { %7551 = vmatmul.mubr.f32.vlgmr.msra.gmra.mrb[12].mxu0 %v3008_v54 }
 0x58a   :  { %7584 = vmatpush3.msra.mxu0 %v8026_v30  ;;  %7585 = vmatprep.mubr.msk.f32.mxu0 %vm7954_vm2, %v7953_v39 }
 0x58b   :  { %7588 = vmatprep.subr.mxu0 %v7953_v39 }
 0x65c   :  { %v3384_v60 = vpop.f32.mrb[12].mxu0 }
 0x65d   :  { %v3389_v61 = vrot.slane %v3384_v60, 6  ;;  %v7552_v62 = vpop.f32.mrb[13].mxu0 }
 0x65f   :  { %v3391_v63 = vadd.f32 %v8096_v2, %v3389_v61 }
 0x661   :  { %7931 = vtanh.f32 %v3391_v63 }
 0x66b   :  { %v7932_v3 = vpop.eup %7931 }
 0x66c   :  { %v3403_v5 = vrot.slane %v7932_v3, 2  ;;  %v3397_v6 = vmul.f32 %v7932_v3, %v3396_v1 }
 0x66e   :  { %v3404_v8 = vsel %vm632_vm3, %v3403_v5, 0  ;;  %v3399_v9 = vrot.slane %v3397_v6, 2 }
 0x66f   :  { %v3472_v11 = vand.u32 4294901760, %v3404_v8 }
 0x670   :  { %v3401_v13 = vadd.f32 %v3399_v9, %v2938_v55 }
 0x671   :  { %v3473_v14 = vsub.f32 %v3404_v8, %v3472_v11 }
 0x673   :  { %v3474_v15 = vand.u32 4294901760, %v3473_v14 }
 0x675   :  { %v3475_v16 = vsub.f32 %v3473_v14, %v3474_v15 }
 0x677   :  { %v3476_v17 = vand.u32 4294901760, %v3475_v16 }
 0x679   :  { %7556 = vmatmul.mubr.f32.vlgmr.msra.gmra.mrb[26].mxu1 %v3476_v17 }
 0x67a   :  { %7559 = vmatpush3.msra.mxu1 %v8045_v41  ;;  %7560 = vmatprep.mubr.msk.f32.mxu1 %vm7954_vm2, %v7953_v39 }
 0x67b   :  { %7563 = vmatprep.subr.mxu1 %v7953_v39 }
 0x681   :  { %7561 = vmatmul.mubr.f32.vlgmr.msra.gmra.mrb[26].mxu1 %v3472_v11 }
 0x682   :  { %7564 = vmatpush3.msra.mxu1 %v8029_v37  ;;  %7565 = vmatprep.mubr.msk.f32.mxu1 %vm7954_vm2, %v7953_v39 }
 0x683   :  { %7568 = vmatprep.subr.mxu1 %v7953_v39 }
 0x689   :  { %7566 = vmatmul.mubr.f32.vlgmr.msra.gmra.mrb[26].mxu1 %v3473_v14 }
 0x68a   :  { %7569 = vmatpush3.msra.mxu1 %v8026_v30  ;;  %7570 = vmatprep.mubr.msk.f32.mxu1 %vm7954_vm2, %v7953_v39 }
 0x68b   :  { %7573 = vmatprep.subr.mxu1 %v7953_v39 }
 0x691   :  { %7571 = vmatmul.mubr.f32.vlgmr.msra.gmra.mrb[26].mxu1 %v3474_v15 }
 0x692   :  { %7574 = vmatpush3.msra.mxu1 %v8035_v38  ;;  %7575 = vmatprep.mubr.msk.f32.mxu1 %vm7954_vm2, %v7953_v39 }
 0x693   :  { %7578 = vmatprep.subr.mxu1 %v7953_v39 }
 0x699   :  { %7576 = vmatmul.mubr.f32.vlgmr.msra.gmra.mrb[26].mxu1 %v3472_v11 }
 0x69a   :  { %7579 = vmatpush3.msra.mxu1 %v8026_v30  ;;  %7580 = vmatprep.mubr.msk.f32.mxu1 %vm7954_vm2, %v7953_v39 }
 0x69b   :  { %7613 = vmatprep.subr.mxu1 %v7953_v39 }
 0x6a1   :  { %7581 = vmatmul.mubr.f32.vlgmr.msra.gmra.mrb[26].mxu1 %v3472_v11 }
 0x6a2   :  { %7614 = vmatpush3.msra.mxu1 %v8026_v30  ;;  %7615 = vmatprep.mubr.msk.f32.mxu1 %vm7954_vm2, %v7953_v39 }
 0x6a3   :  { %7618 = vmatprep.subr.mxu1 %v7953_v39 }
 0x774   :  { %v3848_v18 = vpop.f32.mrb[26].mxu1 }
 0x775   :  { %v3853_v4 = vrot.slane %v3848_v18, 4  ;;  %v7582_v19 = vpop.f32.mrb[27].mxu1 }
 0x776   :  { %v8351_v19 = vld [vmem:[%s8501_s4 + $0x8] sm:$0x3f] }
 0x777   :  { %v3855_v20 = vadd.f32 %v8096_v2, %v3853_v4 }
 0x779   :  { %7933 = vtanh.f32 %v3855_v20  ;;  %v4785_v20 = vrot.slane %v8351_v19, %v1086_v27 }
 0x783   :  { %v7934_v23 = vpop.eup %7933 }
 0x784   :  { %v3861_v24 = vmul.f32 %v7934_v23, %v3860_v22  ;;  %v3867_v29 = vrot.slane %v7934_v23, 4 }
 0x786   :  { %v3863_v31 = vrot.slane %v3861_v24, 4  ;;  %v3868_v32 = vsel %vm632_vm3, %v3867_v29, 0 }
 0x787   :  { %v3936_v33 = vand.u32 4294901760, %v3868_v32 }
 0x788   :  { %v3865_v34 = vadd.f32 %v3863_v31, %v3401_v13 }
 0x789   :  { %v3937_v35 = vsub.f32 %v3868_v32, %v3936_v33 }
 0x78b   :  { %v3938_v36 = vand.u32 4294901760, %v3937_v35 }
 0x78d   :  { %v3939_v40 = vsub.f32 %v3937_v35, %v3938_v36 }
 0x78f   :  { %v3940_v42 = vand.u32 4294901760, %v3939_v40 }
 0x791   :  { %7586 = vmatmul.mubr.f32.vlgmr.msra.gmra.mrb[14].mxu0 %v3940_v42  ;;  %v5245_v42 = vrot.slane %v8351_v19, %v1546_v26 }
 0x792   :  { %7589 = vmatpush3.msra.mxu0 %v8045_v41  ;;  %7590 = vmatprep.mubr.msk.f32.mxu0 %vm7954_vm2, %v7953_v39 }
 0x793   :  { %7593 = vmatprep.subr.mxu0 %v7953_v39 }
 0x799   :  { %7591 = vmatmul.mubr.f32.vlgmr.msra.gmra.mrb[14].mxu0 %v3936_v33 }
 0x79a   :  { %7594 = vmatpush3.msra.mxu0 %v8029_v37  ;;  %7595 = vmatprep.mubr.msk.f32.mxu0 %vm7954_vm2, %v7953_v39 }
 0x79b   :  { %7598 = vmatprep.subr.mxu0 %v7953_v39 }
 0x7a1   :  { %7596 = vmatmul.mubr.f32.vlgmr.msra.gmra.mrb[14].mxu0 %v3937_v35 }
 0x7a2   :  { %7599 = vmatpush3.msra.mxu0 %v8026_v30  ;;  %7600 = vmatprep.mubr.msk.f32.mxu0 %vm7954_vm2, %v7953_v39 }
 0x7a3   :  { %7603 = vmatprep.subr.mxu0 %v7953_v39 }
 0x7a9   :  { %7601 = vmatmul.mubr.f32.vlgmr.msra.gmra.mrb[14].mxu0 %v3938_v36 }
 0x7aa   :  { %7604 = vmatpush3.msra.mxu0 %v8035_v38  ;;  %7605 = vmatprep.mubr.msk.f32.mxu0 %vm7954_vm2, %v7953_v39 }
 0x7ab   :  { %7608 = vmatprep.subr.mxu0 %v7953_v39 }
 0x7b1   :  { %7606 = vmatmul.mubr.f32.vlgmr.msra.gmra.mrb[14].mxu0 %v3936_v33 }
 0x7b2   :  { %7609 = vmatpush3.msra.mxu0 %v8026_v30  ;;  %7610 = vmatprep.mubr.msk.f32.mxu0 %vm7954_vm2, %v7953_v39 }
 0x7b3   :  { %7643 = vmatprep.subr.mxu0 %v7953_v39 }
 0x7b9   :  { %7611 = vmatmul.mubr.f32.vlgmr.msra.gmra.mrb[14].mxu0 %v3936_v33 }
 0x7ba   :  { %7644 = vmatpush3.msra.mxu0 %v8026_v30  ;;  %7645 = vmatprep.mubr.msk.f32.mxu0 %vm7954_vm2, %v7953_v39 }
 0x7bb   :  { %7648 = vmatprep.subr.mxu0 %v7953_v39 }
 0x88c   :  { %v4312_v43 = vpop.f32.mrb[14].mxu0 }
 0x88d   :  { %v4317_v44 = vrot.slane %v4312_v43, 2  ;;  %v7612_v45 = vpop.f32.mrb[15].mxu0 }
 0x88f   :  { %v4319_v46 = vadd.f32 %v8096_v2, %v4317_v44 }
 0x891   :  { %7935 = vtanh.f32 %v4319_v46 }
 0x89b   :  { %v7936_v50 = vpop.eup %7935 }
 0x89c   :  { %v4325_v51 = vmul.f32 %v7936_v50, %v4324_v49  ;;  %v4331_v53 = vrot.slane %v7936_v50, 6 }
 0x89e   :  { %v4327_v54 = vrot.slane %v4325_v51, 6  ;;  %v4332_v55 = vsel %vm632_vm3, %v4331_v53, 0 }
 0x89f   :  { %v4400_v56 = vand.u32 4294901760, %v4332_v55 }
 0x8a0   :  { %v4329_v57 = vadd.f32 %v4327_v54, %v3865_v34 }
 0x8a1   :  { %v4401_v58 = vsub.f32 %v4332_v55, %v4400_v56 }
 0x8a3   :  { %v4402_v59 = vand.u32 4294901760, %v4401_v58 }
 0x8a5   :  { %v4403_v60 = vsub.f32 %v4401_v58, %v4402_v59 }
 0x8a7   :  { %v4404_v61 = vand.u32 4294901760, %v4403_v60 }
 0x8a9   :  { %7616 = vmatmul.mubr.f32.vlgmr.msra.gmra.mrb[28].mxu1 %v4404_v61 }
 0x8aa   :  { %7619 = vmatpush3.msra.mxu1 %v8045_v41  ;;  %7620 = vmatprep.mubr.msk.f32.mxu1 %vm7954_vm2, %v7953_v39 }
 0x8ab   :  { %7623 = vmatprep.subr.mxu1 %v7953_v39 }
 0x8ad   :  { %7621 = vmatmul.mubr.f32.vlgmr.msra.gmra.mrb[30].mxu1 %v4400_v56 }
 0x8ae   :  { %7624 = vmatpush3.msra.mxu1 %v8029_v37  ;;  %7625 = vmatprep.mubr.msk.f32.mxu1 %vm7954_vm2, %v7953_v39 }
 0x8af   :  { %7628 = vmatprep.subr.mxu1 %v7953_v39 }
 0x8b1   :  { %7626 = vmatmul.mubr.f32.vlgmr.msra.gmra.mrb[32].mxu1 %v4401_v58 }
 0x8b2   :  { %7629 = vmatpush3.msra.mxu1 %v8026_v30  ;;  %7630 = vmatprep.mubr.msk.f32.mxu1 %vm7954_vm2, %v7953_v39 }
 0x8b3   :  { %7633 = vmatprep.subr.mxu1 %v7953_v39 }
 0x8b5   :  { %7631 = vmatmul.mubr.f32.vlgmr.msra.gmra.mrb[34].mxu1 %v4402_v59  ;;  %v5709_v59 = vrot.slane %v8351_v19, %v2010_v52 }
 0x8b6   :  { %7634 = vmatpush3.msra.mxu1 %v8035_v38  ;;  %7635 = vmatprep.mubr.msk.f32.mxu1 %vm7954_vm2, %v7953_v39 }
 0x8b7   :  { %7638 = vmatprep.subr.mxu1 %v7953_v39 }
 0x8b9   :  { %7636 = vmatmul.mubr.f32.vlgmr.msra.gmra.mrb[36].mxu1 %v4400_v56 }
 0x8ba   :  { %7639 = vmatpush3.msra.mxu1 %v8026_v30  ;;  %7640 = vmatprep.mubr.msk.f32.mxu1 %vm7954_vm2, %v7953_v39 }
 0x8bb   :  { %7673 = vmatprep.subr.mxu1 %v7953_v39 }
 0x8bd   :  { %7641 = vmatmul.mubr.f32.vlgmr.msra.gmra.mrb[38].mxu1 %v4400_v56 }
 0x8be   :  { %7674 = vmatpush3.msra.mxu1 %v8026_v30  ;;  %7675 = vmatprep.mubr.msk.f32.mxu1 %vm7954_vm2, %v7953_v39 }
 0x8bf   :  { %7678 = vmatprep.subr.mxu1 %v7953_v39 }
 0x97c   :  { %v4406_v2 = vpop.f32.mrb[28].mxu1 }
 0x97d   :  { %v7617_v28 = vpop.f32.mrb[29].mxu1 }
 0x980   :  { %v4482_v62 = vpop.f32.mrb[30].mxu1 }
 0x981   :  { %v4483_v63 = vadd.f32 %v4482_v62, %v4406_v2  ;;  %v7622_v1 = vpop.f32.mrb[31].mxu1 }
 0x984   :  { %v4556_v3 = vpop.f32.mrb[32].mxu1 }
 0x985   :  { %v4557_v5 = vadd.f32 %v4556_v3, %v4483_v63  ;;  %v7627_v6 = vpop.f32.mrb[33].mxu1 }
 0x988   :  { %v4630_v8 = vpop.f32.mrb[34].mxu1 }
 0x989   :  { %v4631_v9 = vadd.f32 %v4630_v8, %v4557_v5  ;;  %v7632_v11 = vpop.f32.mrb[35].mxu1 }
 0x98c   :  { %v4704_v13 = vpop.f32.mrb[36].mxu1 }
 0x98d   :  { %v4705_v14 = vadd.f32 %v4704_v13, %v4631_v9  ;;  %v7637_v15 = vpop.f32.mrb[37].mxu1 }
 0x990   :  { %v4776_v16 = vpop.f32.mrb[38].mxu1 }
 0x991   :  { %v4777_v17 = vadd.f32 %v4776_v16, %v4705_v14  ;;  %v7642_v18 = vpop.f32.mrb[39].mxu1  ;;  %v6173_v14 = vrot.slane %v8351_v19, %v2474_v7 }
 0x993   :  { %v4780_v4 = vadd.f32 %v8103_v12, %v4777_v17 }
 0x995   :  { %7937 = vtanh.f32 %v4780_v4 }
 0x99f   :  { %v7938_v21 = vpop.eup %7937 }
 0x9a0   :  { %v4789_v22 = vsel %vm632_vm3, %v7938_v21, 0  ;;  %v4786_v23 = vmul.f32 %v7938_v21, %v4785_v20 }
 0x9a1   :  { %v4857_v24 = vand.u32 4294901760, %v4789_v22 }
 0x9a2   :  { %v4787_v29 = vadd.f32 %v4786_v23, %v4329_v57 }
 0x9a3   :  { %v4858_v31 = vsub.f32 %v4789_v22, %v4857_v24 }
 0x9a5   :  { %v4859_v32 = vand.u32 4294901760, %v4858_v31 }
 0x9a7   :  { %v4860_v33 = vsub.f32 %v4858_v31, %v4859_v32 }
 0x9a9   :  { %v4861_v34 = vand.u32 4294901760, %v4860_v33 }
 0x9ab   :  { %7646 = vmatmul.mubr.f32.vlgmr.msra.gmra.mrb[16].mxu0 %v4861_v34 }
 0x9ac   :  { %7649 = vmatpush3.msra.mxu0 %v8045_v41  ;;  %7650 = vmatprep.mubr.msk.f32.mxu0 %vm7954_vm2, %v7953_v39 }
 0x9ad   :  { %7653 = vmatprep.subr.mxu0 %v7953_v39 }
 0x9b3   :  { %7651 = vmatmul.mubr.f32.vlgmr.msra.gmra.mrb[16].mxu0 %v4857_v24 }
 0x9b4   :  { %7654 = vmatpush3.msra.mxu0 %v8029_v37  ;;  %7655 = vmatprep.mubr.msk.f32.mxu0 %vm7954_vm2, %v7953_v39 }
 0x9b5   :  { %7658 = vmatprep.subr.mxu0 %v7953_v39 }
 0x9bb   :  { %7656 = vmatmul.mubr.f32.vlgmr.msra.gmra.mrb[16].mxu0 %v4858_v31 }
 0x9bc   :  { %7659 = vmatpush3.msra.mxu0 %v8026_v30  ;;  %7660 = vmatprep.mubr.msk.f32.mxu0 %vm7954_vm2, %v7953_v39 }
 0x9bd   :  { %7663 = vmatprep.subr.mxu0 %v7953_v39 }
 0x9c3   :  { %7661 = vmatmul.mubr.f32.vlgmr.msra.gmra.mrb[16].mxu0 %v4859_v32 }
 0x9c4   :  { %7664 = vmatpush3.msra.mxu0 %v8035_v38  ;;  %7665 = vmatprep.mubr.msk.f32.mxu0 %vm7954_vm2, %v7953_v39 }
 0x9c5   :  { %7668 = vmatprep.subr.mxu0 %v7953_v39 }
 0x9cb   :  { %7666 = vmatmul.mubr.f32.vlgmr.msra.gmra.mrb[16].mxu0 %v4857_v24 }
 0x9cc   :  { %7669 = vmatpush3.msra.mxu0 %v8026_v30  ;;  %7670 = vmatprep.mubr.msk.f32.mxu0 %vm7954_vm2, %v7953_v39 }
 0x9cd   :  { %7703 = vmatprep.subr.mxu0 %v7953_v39 }
 0x9d3   :  { %7671 = vmatmul.mubr.f32.vlgmr.msra.gmra.mrb[16].mxu0 %v4857_v24 }
 0x9d4   :  { %7704 = vmatpush3.msra.mxu0 %v8026_v30  ;;  %7705 = vmatprep.mubr.msk.f32.mxu0 %vm7954_vm2, %v7953_v39 }
 0x9d5   :  { %7708 = vmatprep.subr.mxu0 %v7953_v39 }
 0xaa6   :  { %v5233_v27 = vpop.f32.mrb[16].mxu0 }
 0xaa7   :  { %v5238_v35 = vrot.slane %v5233_v27, 6  ;;  %v7672_v36 = vpop.f32.mrb[17].mxu0 }
 0xaa9   :  { %v5240_v40 = vadd.f32 %v8103_v12, %v5238_v35 }
 0xaab   :  { %7939 = vtanh.f32 %v5240_v40 }
 0xab5   :  { %v7940_v43 = vpop.eup %7939 }
 0xab6   :  { %v5252_v44 = vrot.slane %v7940_v43, 2  ;;  %v5246_v45 = vmul.f32 %v7940_v43, %v5245_v42 }
 0xab8   :  { %v5253_v46 = vsel %vm632_vm3, %v5252_v44, 0  ;;  %v5248_v47 = vrot.slane %v5246_v45, 2 }
 0xab9   :  { %v5321_v49 = vand.u32 4294901760, %v5253_v46 }
 0xaba   :  { %v5250_v50 = vadd.f32 %v5248_v47, %v4787_v29 }
 0xabb   :  { %v5322_v51 = vsub.f32 %v5253_v46, %v5321_v49 }
 0xabd   :  { %v5323_v53 = vand.u32 4294901760, %v5322_v51 }
 0xabf   :  { %v5324_v54 = vsub.f32 %v5322_v51, %v5323_v53 }
 0xac1   :  { %v5325_v55 = vand.u32 4294901760, %v5324_v54 }
 0xac3   :  { %7676 = vmatmul.mubr.f32.vlgmr.msra.gmra.mrb[40].mxu1 %v5325_v55 }
 0xac4   :  { %7679 = vmatpush3.msra.mxu1 %v8045_v41  ;;  %7680 = vmatprep.mubr.msk.f32.mxu1 %vm7954_vm2, %v7953_v39 }
 0xac5   :  { %7683 = vmatprep.subr.mxu1 %v7953_v39 }
 0xacb   :  { %7681 = vmatmul.mubr.f32.vlgmr.msra.gmra.mrb[40].mxu1 %v5321_v49 }
 0xacc   :  { %7684 = vmatpush3.msra.mxu1 %v8029_v37  ;;  %7685 = vmatprep.mubr.msk.f32.mxu1 %vm7954_vm2, %v7953_v39 }
 0xacd   :  { %7688 = vmatprep.subr.mxu1 %v7953_v39 }
 0xad3   :  { %7686 = vmatmul.mubr.f32.vlgmr.msra.gmra.mrb[40].mxu1 %v5322_v51  ;;  %v6634_v51 = vrot.slane %v8351_v19, %v2935_v48 }
 0xad4   :  { %7689 = vmatpush3.msra.mxu1 %v8026_v30  ;;  %7690 = vmatprep.mubr.msk.f32.mxu1 %vm7954_vm2, %v7953_v39 }
 0xad5   :  { %7693 = vmatprep.subr.mxu1 %v7953_v39 }
 0xadb   :  { %7691 = vmatmul.mubr.f32.vlgmr.msra.gmra.mrb[40].mxu1 %v5323_v53 }
 0xadc   :  { %7694 = vmatpush3.msra.mxu1 %v8035_v38  ;;  %7695 = vmatprep.mubr.msk.f32.mxu1 %vm7954_vm2, %v7953_v39 }
 0xadd   :  { %7698 = vmatprep.subr.mxu1 %v7953_v39 }
 0xae3   :  { %7696 = vmatmul.mubr.f32.vlgmr.msra.gmra.mrb[40].mxu1 %v5321_v49 }
 0xae4   :  { %7699 = vmatpush3.msra.mxu1 %v8026_v30  ;;  %7700 = vmatprep.mubr.msk.f32.mxu1 %vm7954_vm2, %v7953_v39 }
 0xae5   :  { %7733 = vmatprep.subr.mxu1 %v7953_v39 }
 0xaeb   :  { %7701 = vmatmul.mubr.f32.vlgmr.msra.gmra.mrb[40].mxu1 %v5321_v49 }
 0xaec   :  { %7734 = vmatpush3.msra.mxu1 %v8026_v30  ;;  %7735 = vmatprep.mubr.msk.f32.mxu1 %vm7954_vm2, %v7953_v39 }
 0xaed   :  { %7738 = vmatprep.subr.mxu1 %v7953_v39 }
 0xbbe   :  { %v5697_v26 = vpop.f32.mrb[40].mxu1 }
 0xbbf   :  { %v5702_v56 = vrot.slane %v5697_v26, 4  ;;  %v7702_v57 = vpop.f32.mrb[41].mxu1 }
 0xbc1   :  { %v5704_v58 = vadd.f32 %v8103_v12, %v5702_v56 }
 0xbc3   :  { %7941 = vtanh.f32 %v5704_v58 }
 0xbcd   :  { %v7942_v60 = vpop.eup %7941 }
 0xbce   :  { %v5716_v61 = vrot.slane %v7942_v60, 4  ;;  %v5710_v2 = vmul.f32 %v7942_v60, %v5709_v59 }
 0xbd0   :  { %v5717_v28 = vsel %vm632_vm3, %v5716_v61, 0  ;;  %v5712_v62 = vrot.slane %v5710_v2, 4  ;;  %v7094_v2 = vrot.slane %v8351_v19, %v3395_v0 }
 0xbd1   :  { %v5785_v63 = vand.u32 4294901760, %v5717_v28 }
 0xbd2   :  { %v5714_v1 = vadd.f32 %v5712_v62, %v5250_v50 }
 0xbd3   :  { %v5786_v3 = vsub.f32 %v5717_v28, %v5785_v63 }
 0xbd5   :  { %v5787_v5 = vand.u32 4294901760, %v5786_v3 }
 0xbd7   :  { %v5788_v6 = vsub.f32 %v5786_v3, %v5787_v5 }
 0xbd9   :  { %v5789_v8 = vand.u32 4294901760, %v5788_v6 }
 0xbdb   :  { %7706 = vmatmul.mubr.f32.vlgmr.msra.gmra.mrb[18].mxu0 %v5789_v8 }
 0xbdc   :  { %7709 = vmatpush3.msra.mxu0 %v8045_v41  ;;  %7710 = vmatprep.mubr.msk.f32.mxu0 %vm7954_vm2, %v7953_v39 }
 0xbdd   :  { %7713 = vmatprep.subr.mxu0 %v7953_v39 }
 0xbe3   :  { %7711 = vmatmul.mubr.f32.vlgmr.msra.gmra.mrb[18].mxu0 %v5785_v63 }
 0xbe4   :  { %7714 = vmatpush3.msra.mxu0 %v8029_v37  ;;  %7715 = vmatprep.mubr.msk.f32.mxu0 %vm7954_vm2, %v7953_v39 }
 0xbe5   :  { %7718 = vmatprep.subr.mxu0 %v7953_v39 }
 0xbeb   :  { %7716 = vmatmul.mubr.f32.vlgmr.msra.gmra.mrb[18].mxu0 %v5786_v3 }
 0xbec   :  { %7719 = vmatpush3.msra.mxu0 %v8026_v30  ;;  %7720 = vmatprep.mubr.msk.f32.mxu0 %vm7954_vm2, %v7953_v39 }
 0xbed   :  { %7723 = vmatprep.subr.mxu0 %v7953_v39 }
 0xbf3   :  { %7721 = vmatmul.mubr.f32.vlgmr.msra.gmra.mrb[18].mxu0 %v5787_v5 }
 0xbf4   :  { %7724 = vmatpush3.msra.mxu0 %v8035_v38  ;;  %7725 = vmatprep.mubr.msk.f32.mxu0 %vm7954_vm2, %v7953_v39 }
 0xbf5   :  { %7728 = vmatprep.subr.mxu0 %v7953_v39 }
 0xbfb   :  { %7726 = vmatmul.mubr.f32.vlgmr.msra.gmra.mrb[18].mxu0 %v5785_v63 }
 0xbfc   :  { %7729 = vmatpush3.msra.mxu0 %v8026_v30  ;;  %7730 = vmatprep.mubr.msk.f32.mxu0 %vm7954_vm2, %v7953_v39 }
 0xbfd   :  { %7763 = vmatprep.subr.mxu0 %v7953_v39 }
 0xc03   :  { %7731 = vmatmul.mubr.f32.vlgmr.msra.gmra.mrb[18].mxu0 %v5785_v63 }
 0xc04   :  { %7764 = vmatpush3.msra.mxu0 %v8026_v30  ;;  %7765 = vmatprep.mubr.msk.f32.mxu0 %vm7954_vm2, %v7953_v39 }
 0xc05   :  { %7768 = vmatprep.subr.mxu0 %v7953_v39 }
 0xcd6   :  { %v6161_v52 = vpop.f32.mrb[18].mxu0 }
 0xcd7   :  { %v6166_v9 = vrot.slane %v6161_v52, 2  ;;  %v7732_v11 = vpop.f32.mrb[19].mxu0 }
 0xcd9   :  { %v6168_v13 = vadd.f32 %v8103_v12, %v6166_v9 }
 0xcdb   :  { %7943 = vtanh.f32 %v6168_v13 }
 0xce5   :  { %v7944_v15 = vpop.eup %7943 }
 0xce6   :  { %v6180_v16 = vrot.slane %v7944_v15, 6  ;;  %v6174_v17 = vmul.f32 %v7944_v15, %v6173_v14 }
 0xce8   :  { %v6181_v18 = vsel %vm632_vm3, %v6180_v16, 0  ;;  %v6176_v4 = vrot.slane %v6174_v17, 6 }
 0xce9   :  { %v6249_v20 = vand.u32 4294901760, %v6181_v18 }
 0xcea   :  { %v6178_v21 = vadd.f32 %v6176_v4, %v5714_v1 }
 0xceb   :  { %v6250_v22 = vsub.f32 %v6181_v18, %v6249_v20 }
 0xced   :  { %v6251_v23 = vand.u32 4294901760, %v6250_v22 }
 0xcef   :  { %v6252_v24 = vsub.f32 %v6250_v22, %v6251_v23 }
 0xcf1   :  { %v6253_v29 = vand.u32 4294901760, %v6252_v24 }
 0xcf3   :  { %7736 = vmatmul.mubr.f32.vlgmr.msra.gmra.mrb[42].mxu1 %v6253_v29 }
 0xcf4   :  { %7739 = vmatpush3.msra.mxu1 %v8045_v41  ;;  %7740 = vmatprep.mubr.msk.f32.mxu1 %vm7954_vm2, %v7953_v39 }
 0xcf5   :  { %7743 = vmatprep.subr.mxu1 %v7953_v39 }
 0xcf7   :  { %7741 = vmatmul.mubr.f32.vlgmr.msra.gmra.mrb[44].mxu1 %v6249_v20 }
 0xcf8   :  { %7744 = vmatpush3.msra.mxu1 %v8029_v37  ;;  %7745 = vmatprep.mubr.msk.f32.mxu1 %vm7954_vm2, %v7953_v39 }
 0xcf9   :  { %7748 = vmatprep.subr.mxu1 %v7953_v39 }
 0xcfb   :  { %7746 = vmatmul.mubr.f32.vlgmr.msra.gmra.mrb[46].mxu1 %v6250_v22 }
 0xcfc   :  { %7749 = vmatpush3.msra.mxu1 %v8026_v30  ;;  %7750 = vmatprep.mubr.msk.f32.mxu1 %vm7954_vm2, %v7953_v39 }
 0xcfd   :  { %7753 = vmatprep.subr.mxu1 %v7953_v39 }
 0xcff   :  { %7751 = vmatmul.mubr.f32.vlgmr.msra.gmra.mrb[48].mxu1 %v6251_v23 }
 0xd00   :  { %7754 = vmatpush3.msra.mxu1 %v8035_v38  ;;  %7755 = vmatprep.mubr.msk.f32.mxu1 %vm7954_vm2, %v7953_v39 }
 0xd01   :  { %7758 = vmatprep.subr.mxu1 %v7953_v39 }
 0xd03   :  { %7756 = vmatmul.mubr.f32.vlgmr.msra.gmra.mrb[50].mxu1 %v6249_v20 }
 0xd04   :  { %7759 = vmatpush3.msra.mxu1 %v8026_v30  ;;  %7760 = vmatprep.mubr.msk.f32.mxu1 %vm7954_vm2, %v7953_v39 }
 0xd07   :  { %7761 = vmatmul.mubr.f32.vlgmr.msra.gmra.mrb[52].mxu1 %v6249_v20 }
 0xdc6   :  { %v6255_v12 = vpop.f32.mrb[42].mxu1 }
 0xdc7   :  { %v7737_v7 = vpop.f32.mrb[43].mxu1 }
 0xdca   :  { %v6331_v31 = vpop.f32.mrb[44].mxu1 }
 0xdcb   :  { %v6332_v32 = vadd.f32 %v6331_v31, %v6255_v12  ;;  %v7742_v33 = vpop.f32.mrb[45].mxu1 }
 0xdce   :  { %v6405_v34 = vpop.f32.mrb[46].mxu1 }
 0xdcf   :  { %v6406_v27 = vadd.f32 %v6405_v34, %v6332_v32  ;;  %v7747_v35 = vpop.f32.mrb[47].mxu1 }
 0xdd2   :  { %v6479_v36 = vpop.f32.mrb[48].mxu1 }
 0xdd3   :  { %v6480_v40 = vadd.f32 %v6479_v36, %v6406_v27  ;;  %v7752_v42 = vpop.f32.mrb[49].mxu1 }
 0xdd6   :  { %v6553_v43 = vpop.f32.mrb[50].mxu1 }
 0xdd7   :  { %v6554_v44 = vadd.f32 %v6553_v43, %v6480_v40  ;;  %v7757_v45 = vpop.f32.mrb[51].mxu1 }
 0xdda   :  { %v6625_v46 = vpop.f32.mrb[52].mxu1 }
 0xddb   :  { %v6626_v47 = vadd.f32 %v6625_v46, %v6554_v44  ;;  %v7762_v49 = vpop.f32.mrb[53].mxu1 }
 0xddd   :  { %v6629_v50 = vadd.f32 %v8101_v10, %v6626_v47 }
 0xddf   :  { %7945 = vtanh.f32 %v6629_v50 }
 0xde9   :  { %v7946_v53 = vpop.eup %7945 }
 0xdea   :  { %v6638_v54 = vsel %vm632_vm3, %v7946_v53, 0  ;;  %v6635_v55 = vmul.f32 %v7946_v53, %v6634_v51 }
 0xdeb   :  { %v6706_v26 = vand.u32 4294901760, %v6638_v54 }
 0xdec   :  { %v6636_v56 = vadd.f32 %v6635_v55, %v6178_v21 }
 0xded   :  { %v6707_v57 = vsub.f32 %v6638_v54, %v6706_v26 }
 0xdef   :  { %v6708_v58 = vand.u32 4294901760, %v6707_v57 }
 0xdf1   :  { %v6709_v59 = vsub.f32 %v6707_v57, %v6708_v58 }
 0xdf3   :  { %v6710_v60 = vand.u32 4294901760, %v6709_v59 }
 0xdf5   :  { %7766 = vmatmul.mubr.f32.vlgmr.msra.gmra.mrb[20].mxu0 %v6710_v60 }
 0xdf6   :  { %7769 = vmatpush3.msra.mxu0 %v8045_v41  ;;  %7770 = vmatprep.mubr.msk.f32.mxu0 %vm7954_vm2, %v7953_v39 }
 0xdf7   :  { %7773 = vmatprep.subr.mxu0 %v7953_v39 }
 0xdfd   :  { %7771 = vmatmul.mubr.f32.vlgmr.msra.gmra.mrb[20].mxu0 %v6706_v26 }
 0xdfe   :  { %7774 = vmatpush3.msra.mxu0 %v8029_v37  ;;  %7775 = vmatprep.mubr.msk.f32.mxu0 %vm7954_vm2, %v7953_v39  ;;  %v11_v37 = vstv %s8502_s5 }
 0xdff   :  { %7778 = vmatprep.subr.mxu0 %v7953_v39  ;;  %12 = vst [vmem:[#allocation2] sm:$0x1] %v11_v37 }
 0xe05   :  { %7776 = vmatmul.mubr.f32.vlgmr.msra.gmra.mrb[20].mxu0 %v6707_v57 }
 0xe06   :  { %7779 = vmatpush3.msra.mxu0 %v8026_v30  ;;  %7780 = vmatprep.mubr.msk.f32.mxu0 %vm7954_vm2, %v7953_v39  ;;  %v7125_v1 = vld [vmem:[#allocation2] ss:$0 sm:$0xff] }
 0xe07   :  { %7783 = vmatprep.subr.mxu0 %v7953_v39 }
 0xe0d   :  { %7781 = vmatmul.mubr.f32.vlgmr.msra.gmra.mrb[20].mxu0 %v6708_v58 }
 0xe0e   :  { %7784 = vmatpush3.msra.mxu0 %v8035_v38  ;;  %7785 = vmatprep.mubr.msk.f32.mxu0 %vm7954_vm2, %v7953_v39 }
 0xe0f   :  { %7788 = vmatprep.subr.mxu0 %v7953_v39 }
 0xe15   :  { %7786 = vmatmul.mubr.f32.vlgmr.msra.gmra.mrb[20].mxu0 %v6706_v26 }
 0xe16   :  { %7789 = vmatpush3.msra.mxu0 %v8026_v30  ;;  %7790 = vmatprep.mubr.msk.f32.mxu0 %vm7954_vm2, %v7953_v39 }
 0xe1d   :  { %7791 = vmatmul.mubr.f32.vlgmr.msra.gmra.mrb[20].mxu0 %v6706_v26 }
 0xef0   :  { %v7082_v41 = vpop.f32.mrb[20].mxu0 }
 0xef1   :  { %v7087_v48 = vrot.slane %v7082_v41, 6  ;;  %v7792_v38 = vpop.f32.mrb[21].mxu0 }
 0xef3   :  { %v7089_v61 = vadd.f32 %v8101_v10, %v7087_v48 }
 0xef5   :  { %7947 = vtanh.f32 %v7089_v61 }
 0xeff   :  { %v7948_v30 = vpop.eup %7947 }
 0xf00   :  { %v7095_v28 = vmul.f32 %v7948_v30, %v7094_v2 }
 0xf02   :  { %v7097_v62 = vrot.slane %v7095_v28, 2 }
 0xf04   :  { %v7099_v39 = vadd.f32 %v7097_v62, %v6636_v56 }
 0xf06   :  { %v7101_v63 = vsel %vm7100_vm4, %v7099_v39, 0.0 }
 0xf07   :  { %7102 = vadd.xlane.f32.xlu0 %v7101_v63 }
 0xf94   :  { %v7103_v3 = vpop.xlane.xlu0 %7102 }
 0xf95   :  { %v7111_v5 = vadd.f32 %v7125_v1, %v7103_v3 }
 0xf97   :  { %v7126_v6 = vmul.f32 -1.442695, %v7111_v5 }
 0xf99   :  { %7949 = vpow2.f32 %v7126_v6 }
 0xfa3   :  { %v7950_v8 = vpop.eup %7949 }
 0xfa4   :  { %v7115_v52 = vadd.f32 1.0, %v7950_v8 }
 0xfa6   :  { %7951 = vrcp.f32 %v7115_v52 }
 0xfb0   :  { %v7952_v10 = vpop.eup %7951 }
 0xfb1   :  { %7119 = vst.msk [vmem:[%s8503_s6] sm:$0x3] %vm7118_vm5, %v7952_v10 }

</bundles_post_ra>
